<compile_context>
chip_gen: v7x
topology: tpu7x:2x2x1
jax: 0.10.0
libtpu: 0.0.40
codegen_flags: <defaults>
</compile_context>

<pallas_src>
import numpy as np
import jax
import jax.numpy as jnp
from jax.experimental import pallas as pl
from jax.experimental.pallas import tpu as pltpu

_BN_EPS = 1e-5
_BN_INV_STD = 1.0 / float(np.sqrt(1.0 + _BN_EPS))  # running_var=1 at init


def _round_up(x, m):
    return ((x + m - 1) // m) * m


# --------------------------------------------------------------------------
# Wrapper-side expansion of conv weights into dense matmul weights.
# The sparsity (9 taps of 64/512 inputs) is paid in extra-but-cheap MXU FLOPs
# instead of in-kernel data movement; built once per parameter set.
# --------------------------------------------------------------------------
def _expand_conv1_weight(w1):
    """w1: (32, 1, 3, 3) OIHW  ->  (64, 2048) dense matmul weight.

    Input rows:  flattened 8x8 image, index ii*8 + jj.
    Output lane: q*512 + s2*32 + co   with q = pool-window position (2x2),
                 s2 = pooled 4x4 spatial index, co = out channel.
    """
    Co = w1.shape[0]                                        # 32
    rows, colbase, taps = [], [], []
    for ih in range(4):
        for jw in range(4):
            s2 = ih * 4 + jw
            for qi in range(2):
                for qj in range(2):
                    q = qi * 2 + qj
                    i, j = 2 * ih + qi, 2 * jw + qj         # conv1 output pos
                    for kh in range(3):
                        for kw in range(3):
                            ii, jj = i + kh - 1, j + kw - 1  # padding=1
                            if 0 <= ii < 8 and 0 <= jj < 8:
                                rows.append(ii * 8 + jj)
                                colbase.append(q * 16 * Co + s2 * Co)
                                taps.append(kh * 3 + kw)
    rows = np.asarray(rows, np.int32)
    cols = (np.asarray(colbase, np.int32)[:, None]
            + np.arange(Co, dtype=np.int32)[None, :])       # (n, 32)
    w1_taps = jnp.transpose(w1[:, 0], (1, 2, 0)).reshape(9, Co)   # [tap, co]
    vals = w1_taps[np.asarray(taps, np.int32)]               # (n, 32)
    return jnp.zeros((64, 4 * 16 * Co), jnp.float32).at[rows[:, None], cols].set(vals)


def _expand_conv2_weight(w2):
    """w2: (64, 32, 3, 3) OIHW  ->  (512, 1024) dense matmul weight.

    Input rows:  pooled conv1 map, index s2*32 + ci (4x4 spatial x 32 ch).
    Output lane: q*256 + s4*64 + co   with q = pool-window position (2x2),
                 s4 = pooled 2x2 spatial index, co = out channel.
    """
    Co, Ci = w2.shape[0], w2.shape[1]                        # 64, 32
    rowbase, colbase, taps = [], [], []
    for oh in range(2):
        for ow in range(2):
            s4 = oh * 2 + ow
            for qi in range(2):
                for qj in range(2):
                    q = qi * 2 + qj
                    oi, oj = 2 * oh + qi, 2 * ow + qj        # conv2 output pos
                    for kh in range(3):
                        for kw in range(3):
                            ii, jj = oi + kh - 1, oj + kw - 1
                            if 0 <= ii < 4 and 0 <= jj < 4:
                                rowbase.append((ii * 4 + jj) * Ci)
                                colbase.append(q * 4 * Co + s4 * Co)
                                taps.append(kh * 3 + kw)
    rows = (np.asarray(rowbase, np.int32)[:, None]
            + np.arange(Ci, dtype=np.int32)[None, :])        # (n, 32)
    cols = (np.asarray(colbase, np.int32)[:, None]
            + np.arange(Co, dtype=np.int32)[None, :])        # (n, 64)
    w2_taps = jnp.transpose(w2, (2, 3, 1, 0)).reshape(9, Ci, Co)  # [tap, ci, co]
    vals = w2_taps[np.asarray(taps, np.int32)]                # (n, 32, 64)
    return (jnp.zeros((16 * Ci, 4 * 4 * Co), jnp.float32)
            .at[rows[:, :, None], cols[:, None, :]].set(vals))


# --------------------------------------------------------------------------
# Fused 2dcnn forward kernel: 4 matmuls + 2 aligned-slice max-pools.
# --------------------------------------------------------------------------
def _fused_2dcnn_kernel(x_ref, w1_ref, b1_ref, w2_ref, b2_ref,
                        l1w_ref, l1b_ref, l2w_ref, l2b_ref, o_ref):
    """x_ref (Bt,64) flattened images; o_ref (Bt,128) lane-padded logits."""
    # conv1 as one dense matmul; lanes ordered q*512 + s2*32 + co.
    y1 = jnp.dot(x_ref[...], w1_ref[...], preferred_element_type=jnp.float32)   # (Bt, 2048)
    # 2x2 maxpool = max of four 512-lane aligned slices (over q), then +b, relu
    # (max of raw dots, then +bias, then relu == relu(maxpool(conv+b)) exactly).
    p1 = jnp.maximum(jnp.maximum(y1[:, 0:512], y1[:, 512:1024]),
                     jnp.maximum(y1[:, 1024:1536], y1[:, 1536:2048]))
    p1 = jnp.maximum(p1 + b1_ref[...], 0.0)                                      # (Bt, 512)

    # conv2 as one dense matmul; lanes ordered q*256 + s4*64 + co.
    y2 = jnp.dot(p1, w2_ref[...], preferred_element_type=jnp.float32)            # (Bt, 1024)
    p2 = jnp.maximum(jnp.maximum(y2[:, 0:256], y2[:, 256:512]),
                     jnp.maximum(y2[:, 512:768], y2[:, 768:1024]))
    p2 = jnp.maximum(p2 + b2_ref[...], 0.0)                                       # (Bt, 256)

    # linear_1 (rows pre-permuted to NCHW flatten order) + relu
    h = jnp.maximum(jnp.dot(p2, l1w_ref[...], preferred_element_type=jnp.float32)
                    + l1b_ref[...], 0.0)                                           # (Bt, 128)
    # TODO(synk): nn.Dropout(p=0.5) stochastic masking only applies in train mode.
    # linear_2, zero-padded to a lane-dense 128-wide output slab.
    o_ref[...] = (jnp.dot(h, l2w_ref[...], preferred_element_type=jnp.float32)
                  + l2b_ref[...]).astype(o_ref.dtype)


def discriminator_2dcnn_forward(x_nchw, p, batch_tile=512):
    B, cin, H, W = x_nchw.shape
    assert cin == 1 and H == 8 and W == 8, "linear_1(256,128) implies 1x8x8 input"

    # Batch tile: multiple of 8 (sublane), large enough to amortize per-step
    # overhead; on v7x keep B >= 2*batch_tile so both TensorCores get steps.
    Bt = min(batch_tile, _round_up(B, 8))
    Bp = _round_up(B, Bt)
    x2 = x_nchw.reshape(B, H * W)
    if Bp != B:
        x2 = jnp.pad(x2, ((0, Bp - B), (0, 0)))

    # One-off weight preprocessing (tiny).
    w1b = _expand_conv1_weight(p["conv1_w"])                          # (64, 2048)
    w2b = _expand_conv2_weight(p["conv2_w"])                          # (512, 1024)
    b1t = jnp.tile(p["conv1_b"], 16).reshape(1, 512)                  # per-lane bias
    b2t = jnp.tile(p["conv2_b"], 4).reshape(1, 256)
    # lin1_w rows are NCHW-flatten order (co*4 + s4); regroup to s4*64 + co.
    l1w = jnp.transpose(p["lin1_w"].reshape(64, 4, 128), (1, 0, 2)).reshape(256, 128)
    l1b = p["lin1_b"].reshape(1, 128)
    l2w = jnp.pad(p["lin2_w"], ((0, 0), (0, 118)))                    # (128, 128)
    l2b = jnp.pad(p["lin2_b"], (0, 118)).reshape(1, 128)

    out = pl.pallas_call(
        _fused_2dcnn_kernel,
        out_shape=jax.ShapeDtypeStruct((Bp, 128), jnp.float32),
        grid_spec=pltpu.PrefetchScalarGridSpec(
            num_scalar_prefetch=0,
            grid=(Bp // Bt,),
            in_specs=[
                pl.BlockSpec((Bt, 64), lambda b: (b, 0)),
                pl.BlockSpec((64, 2048), lambda b: (0, 0)),
                pl.BlockSpec((1, 512), lambda b: (0, 0)),
                pl.BlockSpec((512, 1024), lambda b: (0, 0)),
                pl.BlockSpec((1, 256), lambda b: (0, 0)),
                pl.BlockSpec((256, 128), lambda b: (0, 0)),
                pl.BlockSpec((1, 128), lambda b: (0, 0)),
                pl.BlockSpec((128, 128), lambda b: (0, 0)),
                pl.BlockSpec((1, 128), lambda b: (0, 0)),
            ],
            out_specs=pl.BlockSpec((Bt, 128), lambda b: (b, 0)),
        ),
        compiler_params=pltpu.CompilerParams(
            dimension_semantics=("parallel",),
            vmem_limit_bytes=48 * 1024 * 1024),
    )(x2, w1b, b1t, w2b, b2t, l1w, l1b, l2w, l2b)
    return out[:B, :10]


# --------------------------------------------------------------------------
# 'linear' model kernel (batch-tiled fused matmul chain)
# --------------------------------------------------------------------------
def _linear_disc_kernel(x_ref, w1_ref, b1_ref, g_ref, beta_ref,
                        w2_ref, b2_ref, w3_ref, b3_ref, o_ref):
    """relu(map1) -> BatchNorm1d(eval) -> relu(map2) -> relu(map3)
       -> dropout(eval: identity) -> softmax(dim=1)."""
    h = jnp.maximum(jnp.dot(x_ref[...], w1_ref[...],
                            preferred_element_type=jnp.float32) + b1_ref[...], 0.0)
    # TODO(synk): BatchNorm1d uses fresh running stats (mean=0, var=1), eval mode;
    # trained running stats / train-mode batch statistics must be threaded in.
    h = h * (g_ref[...] * _BN_INV_STD) + beta_ref[...]
    h = jnp.maximum(jnp.dot(h, w2_ref[...],
                            preferred_element_type=jnp.float32) + b2_ref[...], 0.0)
    h3 = jnp.maximum(jnp.dot(h, w3_ref[...],
                             preferred_element_type=jnp.float32) + b3_ref[...], 0.0)  # (Bt, 1)
    # TODO(synk): nn.Dropout(p=0.4) stochastic masking only applies in train mode.
    # nn.Softmax() on a 2-D tensor resolves to dim=1 (width 1 here) -> exactly 1.0;
    # exact exp/div (no approx reciprocal) so the result is bit-exact ones.
    m = jnp.max(h3, axis=-1, keepdims=True)
    e = jnp.exp(h3 - m)
    sm = e / jnp.sum(e, axis=-1, keepdims=True)
    # Lane-dense output slab; wrapper slices [:, :1].
    o_ref[...] = jnp.broadcast_to(sm, o_ref.shape).astype(o_ref.dtype)


def discriminator_linear_forward(x, p, batch_tile=512):
    B, F = x.shape
    Hd = p["map1_w"].shape[1]
    Bt = min(batch_tile, _round_up(B, 8))
    Bp = _round_up(B, Bt)
    xp = jnp.pad(x, ((0, Bp - B), (0, 0))) if Bp != B else x

    out = pl.pallas_call(
        _linear_disc_kernel,
        out_shape=jax.ShapeDtypeStruct((Bp, 128), jnp.float32),
        grid_spec=pltpu.PrefetchScalarGridSpec(
            num_scalar_prefetch=0,
            grid=(Bp // Bt,),
            in_specs=[
                pl.BlockSpec((Bt, F), lambda b: (b, 0)),
                pl.BlockSpec((F, Hd), lambda b: (0, 0)),
                pl.BlockSpec((1, Hd), lambda b: (0, 0)),
                pl.BlockSpec((1, Hd), lambda b: (0, 0)),
                pl.BlockSpec((1, Hd), lambda b: (0, 0)),
                pl.BlockSpec((Hd, Hd), lambda b: (0, 0)),
                pl.BlockSpec((1, Hd), lambda b: (0, 0)),
                pl.BlockSpec((Hd, 1), lambda b: (0, 0)),
                pl.BlockSpec((1, 1), lambda b: (0, 0)),
            ],
            out_specs=pl.BlockSpec((Bt, 128), lambda b: (b, 0)),
        ),
        compiler_params=pltpu.CompilerParams(
            dimension_semantics=("parallel",),
            vmem_limit_bytes=48 * 1024 * 1024),
    )(xp, p["map1_w"], p["map1_b"].reshape(1, -1),
      p["bn_gamma"].reshape(1, -1), p["bn_beta"].reshape(1, -1),
      p["map2_w"], p["map2_b"].reshape(1, -1),
      p["map3_w"], p["map3_b"].reshape(1, -1))
    return out[:B, :1]


# --------------------------------------------------------------------------
# Deterministic parameter init (shapes from the module's __init__)
# --------------------------------------------------------------------------
def init_params_2dcnn(key):
    ks = jax.random.split(key, 8)
    s = 0.1
    return {
        "conv1_w": jax.random.normal(ks[0], (32, 1, 3, 3), jnp.float32) * s,   # OIHW (torch)
        "conv1_b": jax.random.normal(ks[1], (32,), jnp.float32) * s,
        "conv2_w": jax.random.normal(ks[2], (64, 32, 3, 3), jnp.float32) * s,
        "conv2_b": jax.random.normal(ks[3], (64,), jnp.float32) * s,
        "lin1_w": jax.random.normal(ks[4], (256, 128), jnp.float32) * s,        # stored (in,out)
        "lin1_b": jax.random.normal(ks[5], (128,), jnp.float32) * s,
        "lin2_w": jax.random.normal(ks[6], (128, 10), jnp.float32) * s,
        "lin2_b": jax.random.normal(ks[7], (10,), jnp.float32) * s,
    }


def init_params_linear(key, input_shape=16, hidden=32):
    ks = jax.random.split(key, 6)
    s = 0.1
    return {
        "map1_w": jax.random.normal(ks[0], (input_shape, hidden), jnp.float32) * s,
        "map1_b": jax.random.normal(ks[1], (hidden,), jnp.float32) * s,
        "map2_w": jax.random.normal(ks[2], (hidden, hidden), jnp.float32) * s,
        "map2_b": jax.random.normal(ks[3], (hidden,), jnp.float32) * s,
        "map3_w": jax.random.normal(ks[4], (hidden, 1), jnp.float32) * s,
        "map3_b": jax.random.normal(ks[5], (1,), jnp.float32) * s,
        "bn_gamma": jnp.ones((hidden,), jnp.float32),
        "bn_beta": jnp.zeros((hidden,), jnp.float32),
    }


# --------------------------------------------------------------------------
# Pure-JAX references (for sanity checking the kernels)
# --------------------------------------------------------------------------
def _ref_2dcnn(x, p):
    dn = ("NCHW", "OIHW", "NCHW")
    y = jax.lax.conv_general_dilated(x, p["conv1_w"], (1, 1), "SAME", dimension_numbers=dn)
    y = jnp.maximum(y + p["conv1_b"].reshape(1, -1, 1, 1), 0.0)
    y = jax.lax.reduce_window(y, -jnp.inf, jax.lax.max, (1, 1, 2, 2), (1, 1, 2, 2), "VALID")
    y = jax.lax.conv_general_dilated(y, p["conv2_w"], (1, 1), "SAME", dimension_numbers=dn)
    y = jnp.maximum(y + p["conv2_b"].reshape(1, -1, 1, 1), 0.0)
    y = jax.lax.reduce_window(y, -jnp.inf, jax.lax.max, (1, 1, 2, 2), (1, 1, 2, 2), "VALID")
    flat = y.reshape(y.shape[0], -1)
    h = jnp.maximum(flat @ p["lin1_w"] + p["lin1_b"], 0.0)
    return h @ p["lin2_w"] + p["lin2_b"]


def _ref_linear(x, p):
    h = jnp.maximum(x @ p["map1_w"] + p["map1_b"], 0.0)
    h = h * (p["bn_gamma"] * _BN_INV_STD) + p["bn_beta"]
    h = jnp.maximum(h @ p["map2_w"] + p["map2_b"], 0.0)
    h = jnp.maximum(h @ p["map3_w"] + p["map3_b"], 0.0)
    return jax.nn.softmax(h, axis=1)


# --------------------------------------------------------------------------
if __name__ == "__main__":
    key = jax.random.PRNGKey(0)
    k_x1, k_x2, k_p1, k_p2 = jax.random.split(key, 4)

    # ---- model_type == '2dcnn' ----
    # linear_1 expects 256 = 64 * (H/4) * (W/4)  =>  input spatial 8x8, 1 channel.
    x_cnn = jax.random.normal(k_x1, (2, 1, 8, 8), jnp.float32)          # NCHW like PyTorch
    p_cnn = init_params_2dcnn(k_p1)
    out_cnn = jax.block_until_ready(discriminator_2dcnn_forward(x_cnn, p_cnn))
    ref_cnn = jax.block_until_ready(_ref_2dcnn(x_cnn, p_cnn))
    np.testing.assert_allclose(np.asarray(out_cnn), np.asarray(ref_cnn), rtol=1e-2, atol=1e-2)

    # ---- model_type == 'linear' ----
    x_lin = jax.random.normal(k_x2, (4, 16), jnp.float32)                # (batch, input_shape)
    p_lin = init_params_linear(k_p2, input_shape=16, hidden=32)
    out_lin = jax.block_until_ready(discriminator_linear_forward(x_lin, p_lin))
    ref_lin = jax.block_until_ready(_ref_linear(x_lin, p_lin))
    np.testing.assert_allclose(np.asarray(out_lin), np.asarray(ref_lin), rtol=1e-2, atol=1e-2)

    print("KERNEL_OK")
</pallas_src>

<mosaic_0001>
module attributes {stable_mosaic.version = 11 : i64} {
  func.func @_fused_2dcnn_kernel(%arg0: i32, %arg1: memref<8x64xf32, #tpu.memory_space<vmem>>, %arg2: memref<64x2048xf32, #tpu.memory_space<vmem>>, %arg3: memref<1x512xf32, #tpu.memory_space<vmem>>, %arg4: memref<512x1024xf32, #tpu.memory_space<vmem>>, %arg5: memref<1x256xf32, #tpu.memory_space<vmem>>, %arg6: memref<256x128xf32, #tpu.memory_space<vmem>>, %arg7: memref<1x128xf32, #tpu.memory_space<vmem>>, %arg8: memref<128x128xf32, #tpu.memory_space<vmem>>, %arg9: memref<1x128xf32, #tpu.memory_space<vmem>>, %arg10: memref<8x128xf32, #tpu.memory_space<vmem>>) attributes {dimension_semantics = [#tpu.dimension_semantics<parallel>], iteration_bounds = array<i64: 1>, scalar_prefetch = 0 : i64, scratch_operands = 0 : i64, tpu.core_type = #tpu.core_type<tc>, window_params = [{transform_indices = @transform_0, window_bounds = array<i64: 8, 64>}, {pipeline_mode = #tpu.pipeline_mode<synchronous>, transform_indices = @transform_1, window_bounds = array<i64: 64, 2048>}, {pipeline_mode = #tpu.pipeline_mode<synchronous>, transform_indices = @transform_2, window_bounds = array<i64: 1, 512>}, {pipeline_mode = #tpu.pipeline_mode<synchronous>, transform_indices = @transform_3, window_bounds = array<i64: 512, 1024>}, {pipeline_mode = #tpu.pipeline_mode<synchronous>, transform_indices = @transform_4, window_bounds = array<i64: 1, 256>}, {pipeline_mode = #tpu.pipeline_mode<synchronous>, transform_indices = @transform_5, window_bounds = array<i64: 256, 128>}, {pipeline_mode = #tpu.pipeline_mode<synchronous>, transform_indices = @transform_6, window_bounds = array<i64: 1, 128>}, {pipeline_mode = #tpu.pipeline_mode<synchronous>, transform_indices = @transform_7, window_bounds = array<i64: 128, 128>}, {pipeline_mode = #tpu.pipeline_mode<synchronous>, transform_indices = @transform_8, window_bounds = array<i64: 1, 128>}, {transform_indices = @transform_9, window_bounds = array<i64: 8, 128>}]} {
    %c0 = arith.constant 0 : index
    %c0_0 = arith.constant 0 : index
    %0 = vector.load %arg1[%c0, %c0_0] : memref<8x64xf32, #tpu.memory_space<vmem>>, vector<8x64xf32>
    %c0_1 = arith.constant 0 : index
    %c0_2 = arith.constant 0 : index
    %1 = vector.load %arg2[%c0_1, %c0_2] : memref<64x2048xf32, #tpu.memory_space<vmem>>, vector<64x2048xf32>
    %cst = arith.constant dense<0.000000e+00> : vector<8x2048xf32>
    %2 = tpu.matmul %0, %1, %cst {dimension_numbers = #tpu.dot_dimension_numbers<[1], [0], [0], [1], [0, 0, 1, 1], [], []>} : vector<8x64xf32>, vector<64x2048xf32>, vector<8x2048xf32> -> vector<8x2048xf32>
    %3 = vector.extract_strided_slice %2 {offsets = [0, 0], sizes = [8, 512], strides = [1, 1]} : vector<8x2048xf32> to vector<8x512xf32>
    %4 = vector.extract_strided_slice %2 {offsets = [0, 512], sizes = [8, 512], strides = [1, 1]} : vector<8x2048xf32> to vector<8x512xf32>
    %5 = arith.maximumf %3, %4 : vector<8x512xf32>
    %6 = vector.extract_strided_slice %2 {offsets = [0, 1024], sizes = [8, 512], strides = [1, 1]} : vector<8x2048xf32> to vector<8x512xf32>
    %7 = vector.extract_strided_slice %2 {offsets = [0, 1536], sizes = [8, 512], strides = [1, 1]} : vector<8x2048xf32> to vector<8x512xf32>
    %8 = arith.maximumf %6, %7 : vector<8x512xf32>
    %9 = arith.maximumf %5, %8 : vector<8x512xf32>
    %c0_3 = arith.constant 0 : index
    %c0_4 = arith.constant 0 : index
    %10 = vector.load %arg3[%c0_3, %c0_4] : memref<1x512xf32, #tpu.memory_space<vmem>>, vector<1x512xf32>
    %11 = vector.broadcast %10 : vector<1x512xf32> to vector<8x512xf32>
    %12 = arith.addf %9, %11 : vector<8x512xf32>
    %cst_5 = arith.constant 0.000000e+00 : f32
    %13 = vector.broadcast %cst_5 : f32 to vector<8x512xf32>
    %14 = arith.maximumf %12, %13 : vector<8x512xf32>
    %c0_6 = arith.constant 0 : index
    %c0_7 = arith.constant 0 : index
    %15 = vector.load %arg4[%c0_6, %c0_7] : memref<512x1024xf32, #tpu.memory_space<vmem>>, vector<512x1024xf32>
    %cst_8 = arith.constant dense<0.000000e+00> : vector<8x1024xf32>
    %16 = tpu.matmul %14, %15, %cst_8 {dimension_numbers = #tpu.dot_dimension_numbers<[1], [0], [0], [1], [0, 0, 1, 1], [], []>} : vector<8x512xf32>, vector<512x1024xf32>, vector<8x1024xf32> -> vector<8x1024xf32>
    %17 = vector.extract_strided_slice %16 {offsets = [0, 0], sizes = [8, 256], strides = [1, 1]} : vector<8x1024xf32> to vector<8x256xf32>
    %18 = vector.extract_strided_slice %16 {offsets = [0, 256], sizes = [8, 256], strides = [1, 1]} : vector<8x1024xf32> to vector<8x256xf32>
    %19 = arith.maximumf %17, %18 : vector<8x256xf32>
    %20 = vector.extract_strided_slice %16 {offsets = [0, 512], sizes = [8, 256], strides = [1, 1]} : vector<8x1024xf32> to vector<8x256xf32>
    %21 = vector.extract_strided_slice %16 {offsets = [0, 768], sizes = [8, 256], strides = [1, 1]} : vector<8x1024xf32> to vector<8x256xf32>
    %22 = arith.maximumf %20, %21 : vector<8x256xf32>
    %23 = arith.maximumf %19, %22 : vector<8x256xf32>
    %c0_9 = arith.constant 0 : index
    %c0_10 = arith.constant 0 : index
    %24 = vector.load %arg5[%c0_9, %c0_10] : memref<1x256xf32, #tpu.memory_space<vmem>>, vector<1x256xf32>
    %25 = vector.broadcast %24 : vector<1x256xf32> to vector<8x256xf32>
    %26 = arith.addf %23, %25 : vector<8x256xf32>
    %cst_11 = arith.constant 0.000000e+00 : f32
    %27 = vector.broadcast %cst_11 : f32 to vector<8x256xf32>
    %28 = arith.maximumf %26, %27 : vector<8x256xf32>
    %c0_12 = arith.constant 0 : index
    %c0_13 = arith.constant 0 : index
    %29 = vector.load %arg6[%c0_12, %c0_13] : memref<256x128xf32, #tpu.memory_space<vmem>>, vector<256x128xf32>
    %cst_14 = arith.constant dense<0.000000e+00> : vector<8x128xf32>
    %30 = tpu.matmul %28, %29, %cst_14 {dimension_numbers = #tpu.dot_dimension_numbers<[1], [0], [0], [1], [0, 0, 1, 1], [], []>} : vector<8x256xf32>, vector<256x128xf32>, vector<8x128xf32> -> vector<8x128xf32>
    %c0_15 = arith.constant 0 : index
    %c0_16 = arith.constant 0 : index
    %31 = vector.load %arg7[%c0_15, %c0_16] : memref<1x128xf32, #tpu.memory_space<vmem>>, vector<1x128xf32>
    %32 = vector.broadcast %31 : vector<1x128xf32> to vector<8x128xf32>
    %33 = arith.addf %30, %32 : vector<8x128xf32>
    %cst_17 = arith.constant 0.000000e+00 : f32
    %34 = vector.broadcast %cst_17 : f32 to vector<8x128xf32>
    %35 = arith.maximumf %33, %34 : vector<8x128xf32>
    %c0_18 = arith.constant 0 : index
    %c0_19 = arith.constant 0 : index
    %36 = vector.load %arg8[%c0_18, %c0_19] : memref<128x128xf32, #tpu.memory_space<vmem>>, vector<128x128xf32>
    %cst_20 = arith.constant dense<0.000000e+00> : vector<8x128xf32>
    %37 = tpu.matmul %35, %36, %cst_20 {dimension_numbers = #tpu.dot_dimension_numbers<[1], [0], [0], [1], [0, 0, 1, 1], [], []>} : vector<8x128xf32>, vector<128x128xf32>, vector<8x128xf32> -> vector<8x128xf32>
    %c0_21 = arith.constant 0 : index
    %c0_22 = arith.constant 0 : index
    %38 = vector.load %arg9[%c0_21, %c0_22] : memref<1x128xf32, #tpu.memory_space<vmem>>, vector<1x128xf32>
    %39 = vector.broadcast %38 : vector<1x128xf32> to vector<8x128xf32>
    %40 = arith.addf %37, %39 : vector<8x128xf32>
    %c0_23 = arith.constant 0 : index
    %c0_24 = arith.constant 0 : index
    %41 = vector.load %arg10[%c0_23, %c0_24] : memref<8x128xf32, #tpu.memory_space<vmem>>, vector<8x128xf32>
    tpu.vector_store %arg10[%c0_23, %c0_24], %40 {strides = array<i32>} : memref<8x128xf32, #tpu.memory_space<vmem>>, vector<8x128xf32>,
    return
  }
  func.func @transform_0(%arg0: i32) -> (i32, i32) {
    %c0_i32 = arith.constant 0 : i32
    %c0_i32_0 = arith.constant 0 : i32
    return %arg0, %c0_i32 : i32, i32
  }
  func.func @transform_1(%arg0: i32) -> (i32, i32) {
    %c0_i32 = arith.constant 0 : i32
    %c0_i32_0 = arith.constant 0 : i32
    %c0_i32_1 = arith.constant 0 : i32
    return %c0_i32, %c0_i32_0 : i32, i32
  }
  func.func @transform_2(%arg0: i32) -> (i32, i32) {
    %c0_i32 = arith.constant 0 : i32
    %c0_i32_0 = arith.constant 0 : i32
    %c0_i32_1 = arith.constant 0 : i32
    return %c0_i32, %c0_i32_0 : i32, i32
  }
  func.func @transform_3(%arg0: i32) -> (i32, i32) {
    %c0_i32 = arith.constant 0 : i32
    %c0_i32_0 = arith.constant 0 : i32
    %c0_i32_1 = arith.constant 0 : i32
    return %c0_i32, %c0_i32_0 : i32, i32
  }
  func.func @transform_4(%arg0: i32) -> (i32, i32) {
    %c0_i32 = arith.constant 0 : i32
    %c0_i32_0 = arith.constant 0 : i32
    %c0_i32_1 = arith.constant 0 : i32
    return %c0_i32, %c0_i32_0 : i32, i32
  }
  func.func @transform_5(%arg0: i32) -> (i32, i32) {
    %c0_i32 = arith.constant 0 : i32
    %c0_i32_0 = arith.constant 0 : i32
    %c0_i32_1 = arith.constant 0 : i32
    return %c0_i32, %c0_i32_0 : i32, i32
  }
  func.func @transform_6(%arg0: i32) -> (i32, i32) {
    %c0_i32 = arith.constant 0 : i32
    %c0_i32_0 = arith.constant 0 : i32
    %c0_i32_1 = arith.constant 0 : i32
    return %c0_i32, %c0_i32_0 : i32, i32
  }
  func.func @transform_7(%arg0: i32) -> (i32, i32) {
    %c0_i32 = arith.constant 0 : i32
    %c0_i32_0 = arith.constant 0 : i32
    %c0_i32_1 = arith.constant 0 : i32
    return %c0_i32, %c0_i32_0 : i32, i32
  }
  func.func @transform_8(%arg0: i32) -> (i32, i32) {
    %c0_i32 = arith.constant 0 : i32
    %c0_i32_0 = arith.constant 0 : i32
    %c0_i32_1 = arith.constant 0 : i32
    return %c0_i32, %c0_i32_0 : i32, i32
  }
  func.func @transform_9(%arg0: i32) -> (i32, i32) {
    %c0_i32 = arith.constant 0 : i32
    %c0_i32_0 = arith.constant 0 : i32
    return %arg0, %c0_i32 : i32, i32
  }
}

</mosaic_0001>

<bundles_post_ra>
// kernel: tpu_custom_call.1
= control target key start
LH: loop header
LB: loop body
LE: loop exit
PB: predicated region body
PF: predicated region fallthrough
CT: control target
= control target key end

     0   :  { %14 = vsyncpa [#allocation3], 0  ;;  %s3537_s0 = inlined_call_operand.hbm [shape: f32[8,64], index: 0, kind: input, shape index: {}]   ;;  %s3538_s1 = inlined_call_operand.hbm [shape: f32[64,2048], index: 1, kind: input, shape index: {}]   ;;  %s3539_s2 = inlined_call_operand.hbm [shape: f32[1,512], index: 2, kind: input, shape index: {}]   ;;  %s3540_s3 = inlined_call_operand.hbm [shape: f32[512,1024], index: 3, kind: input, shape index: {}]   ;;  %s3541_s4 = inlined_call_operand.hbm [shape: f32[1,256], index: 4, kind: input, shape index: {}]   ;;  %s3542_s5 = inlined_call_operand.hbm [shape: f32[256,128], index: 5, kind: input, shape index: {}]   ;;  %s3543_s6 = inlined_call_operand.hbm [shape: f32[1,128], index: 6, kind: input, shape index: {}]   ;;  %s3544_s7 = inlined_call_operand.hbm [shape: f32[128,128], index: 7, kind: input, shape index: {}]   ;;  %s3545_s8 = inlined_call_operand.hbm [shape: f32[1,128], index: 8, kind: input, shape index: {}]   ;;  %s3546_s9 = inlined_call_operand.hbm [shape: f32[8,128], index: 9, kind: output, shape index: {}]  }
   0x1   :  { %15 = vsyncpa [#allocation6], 0 }
   0x2   :  { %16 = vsyncpa [#allocation9], 0 }
   0x3   :  { %17 = vsyncpa [#allocation12], 0 }
   0x4   :  { %18 = vsyncpa [#allocation15], 0 }
   0x5   :  { %19 = vsyncpa [#allocation4], 0  ;;  %s3264_s30 = smov [#allocation5]   ;;  %s3032_s13 = scalar_lea.hbm %s3538_s1, 16384 }
   0x6   :  { %s35_s10 = sshll.u32 %s3264_s30, 4  ;;  %p3033_p0 = scmp.ne.s32.totalorder %s3538_s1, %s3032_s13  ;;  %s36_s10 = int_to_ptr.vmem [resolvable:$true] %s35_s10 }
   0x7   :  { %p3036_p1 = scmp.lt.u32.totalorder %s3032_s13, %s3538_s1 }
   0x9   :  { %p3038_p2 = pnand %p3036_p1, %p3033_p0 }
   0xb   :  { %3041 = shalt.err (!%p3038_p2)
}
   0xc   :  { %s3042_s18 = scalar_lea.vmem %s36_s10, 16384  ;;  %p3047_p4 = scmp.lt.s32.totalorder %s36_s10, %s36_s10 }
   0xd   :  { %p3043_p3 = scmp.ne.s32.totalorder %s36_s10, %s3042_s18  ;;  %p3048_p5 = scmp.lt.s32.totalorder %s3042_s18, %s3042_s18 }
   0xf   :  { %p3049_p6 = por %p3048_p5, %p3047_p4 }
  0x11   :  { %p3050_p7 = pnand %p3049_p6, %p3043_p3 }
  0x13   :  { %3053 = shalt.err (!%p3050_p7)
}
  0x14   :  { %s3265_s19 = smov 2048   ;;  %s3266_s20 = smov 128  }
  0x15   :  { %41 = dma.hbm_to_vmem [thread:$0]  %s3538_s1, 16384, %s36_s10, [#allocation6], %s3265_s19, %s3265_s19, %s3266_s20  }
  0x16   :  { %s3267_s23 = smov [#allocation8]   ;;  %s3054_s27 = scalar_lea.hbm %s3540_s3, 65536 }
  0x17   :  { %s57_s24 = sshll.u32 %s3267_s23, 4  ;;  %p3055_p8 = scmp.ne.s32.totalorder %s3540_s3, %s3054_s27  ;;  %s58_s24 = int_to_ptr.vmem [resolvable:$true] %s57_s24 }
  0x18   :  { %p3058_p9 = scmp.lt.u32.totalorder %s3054_s27, %s3540_s3 }
  0x1a   :  { %p3060_p10 = pnand %p3058_p9, %p3055_p8 }
  0x1c   :  { %3063 = shalt.err (!%p3060_p10)
}
  0x1d   :  { %s3064_s12 = scalar_lea.vmem %s58_s24, 65536  ;;  %p3069_p12 = scmp.lt.s32.totalorder %s58_s24, %s58_s24 }
  0x1e   :  { %p3065_p11 = scmp.ne.s32.totalorder %s58_s24, %s3064_s12  ;;  %p3070_p13 = scmp.lt.s32.totalorder %s3064_s12, %s3064_s12 }
  0x20   :  { %p3071_p0 = por %p3070_p13, %p3069_p12 }
  0x22   :  { %p3072_p1 = pnand %p3071_p0, %p3065_p11 }
  0x24   :  { %3075 = shalt.err (!%p3072_p1)
}
  0x25   :  { %s3268_s1 = smov 1024   ;;  %s3269_s10 = smov 64  }
  0x26   :  { %63 = dma.hbm_to_vmem [thread:$0]  %s3540_s3, 65536, %s58_s24, [#allocation9], %s3268_s1, %s3268_s1, %s3269_s10  }
  0x27   :  { %s3270_s15 = smov [#allocation11]   ;;  %s3271_s17 = smov [#allocation14]  }
  0x28   :  { %s79_s16 = sshll.u32 %s3270_s15, 4  ;;  %s101_s18 = sshll.u32 %s3271_s17, 4  ;;  %s80_s16 = int_to_ptr.vmem [resolvable:$true] %s79_s16  ;;  %s102_s18 = int_to_ptr.vmem [resolvable:$true] %s101_s18 }
  0x29   :  { %s3076_s22 = scalar_lea.hbm %s3542_s5, 4096 }
  0x2a   :  { %p3077_p2 = scmp.ne.s32.totalorder %s3542_s5, %s3076_s22  ;;  %p3080_p3 = scmp.lt.u32.totalorder %s3076_s22, %s3542_s5 }
  0x2c   :  { %p3082_p4 = pnand %p3080_p3, %p3077_p2 }
  0x2e   :  { %3085 = shalt.err (!%p3082_p4)
}
  0x2f   :  { %s3086_s3 = scalar_lea.vmem %s80_s16, 4096  ;;  %p3091_p6 = scmp.lt.s32.totalorder %s80_s16, %s80_s16 }
  0x30   :  { %p3087_p5 = scmp.ne.s32.totalorder %s80_s16, %s3086_s3  ;;  %p3092_p7 = scmp.lt.s32.totalorder %s3086_s3, %s3086_s3 }
  0x32   :  { %p3093_p8 = por %p3092_p7, %p3091_p6 }
  0x34   :  { %p3094_p9 = pnand %p3093_p8, %p3087_p5 }
  0x36   :  { %3097 = shalt.err (!%p3094_p9)
}
  0x37   :  { %s3272_s24 = smov 8   ;;  %s3098_s12 = scalar_lea.hbm %s3544_s7, 2048 }
  0x38   :  { %85 = dma.hbm_to_vmem [thread:$0]  %s3542_s5, 4096, %s80_s16, [#allocation12], %s3266_s20, %s3266_s20, %s3272_s24  }
  0x39   :  { %p3099_p10 = scmp.ne.s32.totalorder %s3544_s7, %s3098_s12  ;;  %p3102_p11 = scmp.lt.u32.totalorder %s3098_s12, %s3544_s7 }
  0x3b   :  { %p3104_p12 = pnand %p3102_p11, %p3099_p10 }
  0x3d   :  { %3107 = shalt.err (!%p3104_p12)
}
  0x3e   :  { %s3108_s15 = scalar_lea.vmem %s102_s18, 2048  ;;  %p3113_p0 = scmp.lt.s32.totalorder %s102_s18, %s102_s18 }
  0x3f   :  { %p3109_p13 = scmp.ne.s32.totalorder %s102_s18, %s3108_s15  ;;  %p3114_p1 = scmp.lt.s32.totalorder %s3108_s15, %s3108_s15 }
  0x41   :  { %p3115_p2 = por %p3114_p1, %p3113_p0 }
  0x43   :  { %p3116_p3 = pnand %p3115_p2, %p3109_p13 }
  0x45   :  { %3119 = shalt.err (!%p3116_p3)
}
  0x46   :  { %107 = dma.hbm_to_vmem [thread:$0]  %s3544_s7, 2048, %s102_s18, [#allocation15], %s3266_s20, %s3266_s20, %s3272_s24  }
  0x47   :  { %s3273_s17 = smov [#allocation2]   ;;  %s3274_s21 = smov [#allocation7]  }
  0x48   :  { %s26_s19 = sshll.u32 %s3273_s17, 4  ;;  %s48_s22 = sshll.u32 %s3274_s21, 4  ;;  %s27_s19 = int_to_ptr.vmem [resolvable:$true] %s26_s19  ;;  %s49_s22 = int_to_ptr.vmem [resolvable:$true] %s48_s22 }
  0x49   :  { %s3120_s26 = scalar_lea.hbm %s3537_s0, 128 }
  0x4a   :  { %p3121_p4 = scmp.ne.s32.totalorder %s3537_s0, %s3120_s26  ;;  %p3124_p5 = scmp.lt.u32.totalorder %s3120_s26, %s3537_s0 }
  0x4c   :  { %p3126_p6 = pnand %p3124_p5, %p3121_p4 }
  0x4e   :  { %3129 = shalt.err (!%p3126_p6)
}
  0x4f   :  { %s3130_s7 = scalar_lea.vmem %s27_s19, 128  ;;  %p3135_p8 = scmp.lt.s32.totalorder %s27_s19, %s27_s19 }
  0x50   :  { %p3131_p7 = scmp.ne.s32.totalorder %s27_s19, %s3130_s7  ;;  %p3136_p9 = scmp.lt.s32.totalorder %s3130_s7, %s3130_s7 }
  0x52   :  { %p3137_p10 = por %p3136_p9, %p3135_p8 }
  0x54   :  { %p3138_p11 = pnand %p3137_p10, %p3131_p7 }
  0x56   :  { %3141 = shalt.err (!%p3138_p11)
}
  0x57   :  { %29 = dma.hbm_to_vmem [thread:$0]  %s3537_s0, 128, %s27_s19, [#allocation3]  }
  0x58   :  { %s3142_s11 = scalar_lea.hbm %s3539_s2, 64 }
  0x59   :  { %p3143_p12 = scmp.ne.s32.totalorder %s3539_s2, %s3142_s11  ;;  %p3146_p13 = scmp.lt.u32.totalorder %s3142_s11, %s3539_s2 }
  0x5b   :  { %p3148_p0 = pnand %p3146_p13, %p3143_p12 }
  0x5d   :  { %3151 = shalt.err (!%p3148_p0)
}
  0x5e   :  { %s3152_s14 = scalar_lea.vmem %s49_s22, 64  ;;  %p3157_p2 = scmp.lt.s32.totalorder %s49_s22, %s49_s22 }
  0x5f   :  { %p3153_p1 = scmp.ne.s32.totalorder %s49_s22, %s3152_s14  ;;  %p3158_p3 = scmp.lt.s32.totalorder %s3152_s14, %s3152_s14 }
  0x61   :  { %p3159_p4 = por %p3158_p3, %p3157_p2 }
  0x63   :  { %p3160_p5 = pnand %p3159_p4, %p3153_p1 }
  0x65   :  { %3163 = shalt.err (!%p3160_p5)
}
  0x66   :  { %51 = dma.hbm_to_vmem [thread:$0]  %s3539_s2, 64, %s49_s22, [#allocation6]  }
  0x67   :  { %s3275_s5 = smov [#allocation10]   ;;  %s3276_s17 = smov [#allocation13]  }
  0x68   :  { %s70_s16 = sshll.u32 %s3275_s5, 4  ;;  %s92_s19 = sshll.u32 %s3276_s17, 4  ;;  %s71_s16 = int_to_ptr.vmem [resolvable:$true] %s70_s16  ;;  %s93_s19 = int_to_ptr.vmem [resolvable:$true] %s92_s19 }
  0x69   :  { %s3164_s25 = scalar_lea.hbm %s3541_s4, 32 }
  0x6a   :  { %p3165_p6 = scmp.ne.s32.totalorder %s3541_s4, %s3164_s25  ;;  %p3168_p7 = scmp.lt.u32.totalorder %s3164_s25, %s3541_s4 }
  0x6c   :  { %p3170_p8 = pnand %p3168_p7, %p3165_p6 }
  0x6e   :  { %3173 = shalt.err (!%p3170_p8)
}
  0x6f   :  { %s3174_s2 = scalar_lea.vmem %s71_s16, 32  ;;  %p3179_p10 = scmp.lt.s32.totalorder %s71_s16, %s71_s16 }
  0x70   :  { %p3175_p9 = scmp.ne.s32.totalorder %s71_s16, %s3174_s2  ;;  %p3180_p11 = scmp.lt.s32.totalorder %s3174_s2, %s3174_s2 }
  0x72   :  { %p3181_p12 = por %p3180_p11, %p3179_p10 }
  0x74   :  { %p3182_p13 = pnand %p3181_p12, %p3175_p9 }
  0x76   :  { %3185 = shalt.err (!%p3182_p13)
}
  0x77   :  { %73 = dma.hbm_to_vmem [thread:$0]  %s3541_s4, 32, %s71_s16, [#allocation9]  }
  0x78   :  { %s3186_s18 = scalar_lea.hbm %s3543_s6, 16 }
  0x79   :  { %p3187_p0 = scmp.ne.s32.totalorder %s3543_s6, %s3186_s18  ;;  %p3190_p1 = scmp.lt.u32.totalorder %s3186_s18, %s3543_s6 }
  0x7b   :  { %p3192_p2 = pnand %p3190_p1, %p3187_p0 }
  0x7d   :  { %3195 = shalt.err (!%p3192_p2)
}
  0x7e   :  { %s3196_s1 = scalar_lea.vmem %s93_s19, 16  ;;  %s3200_s10 = scalar_lea.vmem %s93_s19, 32 }
  0x7f   :  { %p3197_p3 = scmp.ne.s32.totalorder %s93_s19, %s3196_s1  ;;  %p3201_p4 = scmp.lt.s32.totalorder %s93_s19, %s93_s19 }
  0x80   :  { %p3202_p5 = scmp.lt.s32.totalorder %s3200_s10, %s3196_s1 }
  0x82   :  { %p3203_p6 = por %p3202_p5, %p3201_p4 }
  0x84   :  { %p3204_p7 = pnand %p3203_p6, %p3197_p3 }
  0x86   :  { %3207 = shalt.err (!%p3204_p7)
}
  0x87   :  { %95 = dma.hbm_to_vmem [thread:$0]  %s3543_s6, 16, %s93_s19, [#allocation12]  }
  0x88   :  { %s3277_s14 = smov [#allocation16]   ;;  %s3208_s16 = scalar_lea.hbm %s3545_s8, 16 }
  0x89   :  { %s114_s0 = sshll.u32 %s3277_s14, 4  ;;  %p3209_p8 = scmp.ne.s32.totalorder %s3545_s8, %s3208_s16  ;;  %s115_s0 = int_to_ptr.vmem [resolvable:$true] %s114_s0 }
  0x8a   :  { %p3212_p9 = scmp.lt.u32.totalorder %s3208_s16, %s3545_s8 }
  0x8c   :  { %p3214_p10 = pnand %p3212_p9, %p3209_p8 }
  0x8e   :  { %3217 = shalt.err (!%p3214_p10)
}
  0x8f   :  { %s3218_s26 = scalar_lea.vmem %s115_s0, 16  ;;  %s3222_s6 = scalar_lea.vmem %s115_s0, 32 }
  0x90   :  { %p3219_p11 = scmp.ne.s32.totalorder %s115_s0, %s3218_s26  ;;  %p3223_p12 = scmp.lt.s32.totalorder %s115_s0, %s115_s0 }
  0x91   :  { %p3224_p13 = scmp.lt.s32.totalorder %s3222_s6, %s3218_s26 }
  0x93   :  { %p3225_p0 = por %p3224_p13, %p3223_p12 }
  0x95   :  { %p3226_p1 = pnand %p3225_p0, %p3219_p11 }
  0x97   :  { %3229 = shalt.err (!%p3226_p1)
}
  0x98   :  { %117 = dma.hbm_to_vmem [thread:$0]  %s3545_s8, 16, %s115_s0, [#allocation15]  }
  0x99   :  { %3252 = dma.done.wait [#allocation3], 128  }
  0x9a   :  { %3253 = vsyncadd [#allocation3], 4294967168 }
  0x9b   :  { %3254 = dma.done.wait [#allocation6], 16448  }
  0x9c   :  { %3255 = vsyncadd [#allocation6], 4294950848 }
  0x9d   :  { %3256 = dma.done.wait [#allocation9], 65568  }
  0x9e   :  { %3257 = vsyncadd [#allocation9], 4294901728 }
  0x9f   :  { %3258 = dma.done.wait [#allocation12], 4112  }
  0xa0   :  { %3259 = vsyncadd [#allocation12], 4294963184 }
  0xa1   :  { %3260 = dma.done.wait [#allocation15], 2064  }
  0xa2   :  { %3261 = vsyncadd [#allocation15], 4294965232  ;;  %v3278_v0 = vmov 0.0   ;;  %v147_v1 = vld [vmem:[#allocation5 + $0x8] sm:$0xff]  ;;  %v146_v3 = vld [vmem:[#allocation5] sm:$0xff]  ;;  %vm274_vm0 = vcmask 523264  }
  0xa3   :  { %342 = vmatprep.mubr.f32.mxu0 %v3278_v0  ;;  %413 = vmatprep.mubr.f32.mxu1 %v3278_v0  ;;  %v163_v2 = vld [vmem:[#allocation5 + $0x88] sm:$0xff]  ;;  %v162_v5 = vld [vmem:[#allocation5 + $0x80] sm:$0xff]  ;;  %v149_v18 = vld [vmem:[#allocation5 + $0x18] sm:$0xff]  ;;  %vm3280_vm1 = vmmov 0   ;;  %s3281_s8 = smov [#allocation17]  }
  0xa4   :  { %v2310_v4 = vpack.c.bf16 %v163_v2, %v147_v1  ;;  %v179_v6 = vld [vmem:[#allocation5 + $0x108] sm:$0xff]  ;;  %v2312_v8 = vpack.c.bf16 %v162_v5, %v146_v3  ;;  %v178_v10 = vld [vmem:[#allocation5 + $0x100] sm:$0xff]  ;;  %v165_v21 = vld [vmem:[#allocation5 + $0x98] sm:$0xff]  ;;  %s2200_s3 = sshll.u32 %s3281_s8, 4  ;;  %s2201_s3 = int_to_ptr.vmem [resolvable:$true] %s2200_s3 }
  0xa5   :  { %v195_v7 = vld [vmem:[#allocation5 + $0x188] sm:$0xff]  ;;  %v194_v11 = vld [vmem:[#allocation5 + $0x180] sm:$0xff]  ;;  %v2326_v22 = vpack.c.bf16 %v165_v21, %v149_v18  ;;  %v148_v23 = vld [vmem:[#allocation5 + $0x10] sm:$0xff]  ;;  %s3230_s28 = scalar_lea.vmem %s2201_s3, 128  ;;  %p3235_p3 = scmp.lt.s32.totalorder %s2201_s3, %s2201_s3 }
  0xa6   :  { %v2314_v9 = vpack.c.bf16 %v195_v7, %v179_v6  ;;  %v211_v12 = vld [vmem:[#allocation5 + $0x208] sm:$0xff]  ;;  %2311 = vmatprep.subr.bf16.mxu0 %v2310_v4  ;;  %v2316_v14 = vpack.c.bf16 %v194_v11, %v178_v10  ;;  %v210_v16 = vld [vmem:[#allocation5 + $0x200] sm:$0xff]  ;;  %v164_v24 = vld [vmem:[#allocation5 + $0x90] sm:$0xff]  ;;  %p3231_p2 = scmp.ne.s32.totalorder %s2201_s3, %s3230_s28  ;;  %p3236_p4 = scmp.lt.s32.totalorder %s3230_s28, %s3230_s28 }
  0xa7   :  { %v227_v13 = vld [vmem:[#allocation5 + $0x288] sm:$0xff]  ;;  %2313 = vmatpush1.bf16.msra.mxu0 %v2312_v8  ;;  %v226_v17 = vld [vmem:[#allocation5 + $0x280] sm:$0xff]  ;;  %v2328_v26 = vpack.c.bf16 %v164_v24, %v148_v23  ;;  %v181_v27 = vld [vmem:[#allocation5 + $0x118] sm:$0xff]  ;;  %2327 = vmatprep.subr.bf16.mxu1 %v2326_v22 }
  0xa8   :  { %2315 = vmatprep.subr.bf16.mxu0 %v2314_v9  ;;  %v2318_v15 = vpack.c.bf16 %v227_v13, %v211_v12  ;;  %v243_v19 = vld [vmem:[#allocation5 + $0x308] sm:$0xff]  ;;  %v2320_v25 = vpack.c.bf16 %v226_v17, %v210_v16  ;;  %v197_v28 = vld [vmem:[#allocation5 + $0x198] sm:$0xff]  ;;  %v242_v30 = vld [vmem:[#allocation5 + $0x300] sm:$0xff]  ;;  %p3237_p5 = por %p3236_p4, %p3235_p3 }
  0xa9   :  { %v259_v20 = vld [vmem:[#allocation5 + $0x388] sm:$0xff]  ;;  %v258_v31 = vld [vmem:[#allocation5 + $0x380] sm:$0xff]  ;;  %v2330_v32 = vpack.c.bf16 %v197_v28, %v181_v27  ;;  %v180_v33 = vld [vmem:[#allocation5 + $0x110] sm:$0xff]  ;;  %2329 = vmatpush1.bf16.msra.mxu1 %v2328_v26 }
  0xaa   :  { %v2322_v29 = vpack.c.bf16 %v259_v20, %v243_v19  ;;  %v151_v34 = vld [vmem:[#allocation5 + $0x28] sm:$0xff]  ;;  %v196_v36 = vld [vmem:[#allocation5 + $0x190] sm:$0xff]  ;;  %v213_v38 = vld [vmem:[#allocation5 + $0x218] sm:$0xff]  ;;  %v2324_v40 = vpack.c.bf16 %v258_v31, %v242_v30  ;;  %p3238_p6 = pnand %p3237_p5, %p3231_p2 }
  0xab   :  { %2317 = vmatpush1.bf16.msra.mxu0 %v2316_v14  ;;  %v167_v35 = vld [vmem:[#allocation5 + $0xa8] sm:$0xff]  ;;  %2331 = vmatprep.subr.bf16.mxu1 %v2330_v32  ;;  %v2332_v37 = vpack.c.bf16 %v196_v36, %v180_v33  ;;  %v229_v39 = vld [vmem:[#allocation5 + $0x298] sm:$0xff]  ;;  %v212_v42 = vld [vmem:[#allocation5 + $0x210] sm:$0xff] }
  0xac   :  { %2319 = vmatprep.subr.bf16.mxu0 %v2318_v15  ;;  %v2334_v41 = vpack.c.bf16 %v229_v39, %v213_v38  ;;  %v228_v43 = vld [vmem:[#allocation5 + $0x290] sm:$0xff]  ;;  %v2342_v44 = vpack.c.bf16 %v167_v35, %v151_v34  ;;  %v150_v45 = vld [vmem:[#allocation5 + $0x20] sm:$0xff]  ;;  %v245_v47 = vld [vmem:[#allocation5 + $0x318] sm:$0xff] }
  0xad   :  { %v166_v46 = vld [vmem:[#allocation5 + $0xa0] sm:$0xff]  ;;  %v183_v48 = vld [vmem:[#allocation5 + $0x128] sm:$0xff]  ;;  %2333 = vmatpush1.bf16.msra.mxu1 %v2332_v37  ;;  %v2336_v50 = vpack.c.bf16 %v228_v43, %v212_v42  ;;  %v261_v51 = vld [vmem:[#allocation5 + $0x398] sm:$0xff] }
  0xae   :  { %v199_v49 = vld [vmem:[#allocation5 + $0x1a8] sm:$0xff]  ;;  %2335 = vmatprep.subr.bf16.mxu1 %v2334_v41  ;;  %v2338_v52 = vpack.c.bf16 %v261_v51, %v245_v47  ;;  %v244_v53 = vld [vmem:[#allocation5 + $0x310] sm:$0xff]  ;;  %v3447_v55 = vld [vmem:[#allocation2] sm:$0xff]  ;;  %v2344_v56 = vpack.c.bf16 %v166_v46, %v150_v45 }
  0xaf   :  { %2321 = vmatpush1.bf16.msra.mxu0 %v2320_v25  ;;  %v260_v54 = vld [vmem:[#allocation5 + $0x390] sm:$0xff]  ;;  %v153_v57 = vld [vmem:[#allocation5 + $0x38] sm:$0xff]  ;;  %v2346_v59 = vpack.c.bf16 %v199_v49, %v183_v48  ;;  %v182_v60 = vld [vmem:[#allocation5 + $0x120] sm:$0xff] }
  0xb0   :  { %2323 = vmatprep.subr.bf16.mxu0 %v2322_v29  ;;  %v169_v58 = vld [vmem:[#allocation5 + $0xb8] sm:$0xff]  ;;  %v198_v61 = vld [vmem:[#allocation5 + $0x1a0] sm:$0xff]  ;;  %v215_v62 = vld [vmem:[#allocation5 + $0x228] sm:$0xff]  ;;  %v2340_v1 = vpack.c.bf16 %v260_v54, %v244_v53 }
  0xb1   :  { %v231_v63 = vld [vmem:[#allocation5 + $0x2a8] sm:$0xff]  ;;  %2337 = vmatpush1.bf16.msra.mxu1 %v2336_v50  ;;  %v2358_v2 = vpack.c.bf16 %v169_v58, %v153_v57  ;;  %v152_v3 = vld [vmem:[#allocation5 + $0x30] sm:$0xff]  ;;  %v2348_v5 = vpack.c.bf16 %v198_v61, %v182_v60  ;;  %v185_v6 = vld [vmem:[#allocation5 + $0x138] sm:$0xff] }
  0xb2   :  { %2339 = vmatprep.subr.bf16.mxu1 %v2338_v52  ;;  %v168_v4 = vld [vmem:[#allocation5 + $0xb0] sm:$0xff]  ;;  %v201_v7 = vld [vmem:[#allocation5 + $0x1b8] sm:$0xff]  ;;  %v2350_v8 = vpack.c.bf16 %v231_v63, %v215_v62  ;;  %v214_v9 = vld [vmem:[#allocation5 + $0x220] sm:$0xff] }
  0xb3   :  { %2325 = vmatpush1.bf16.msra.mxu0 %v2324_v40  ;;  %v230_v10 = vld [vmem:[#allocation5 + $0x2a0] sm:$0xff]  ;;  %v247_v11 = vld [vmem:[#allocation5 + $0x328] sm:$0xff]  ;;  %v2360_v13 = vpack.c.bf16 %v168_v4, %v152_v3  ;;  %v2362_v14 = vpack.c.bf16 %v201_v7, %v185_v6  ;;  %v184_v15 = vld [vmem:[#allocation5 + $0x130] sm:$0xff] }
  0xb4   :  { %2343 = vmatprep.subr.bf16.mxu0 %v2342_v44  ;;  %v263_v12 = vld [vmem:[#allocation5 + $0x3a8] sm:$0xff]  ;;  %v200_v16 = vld [vmem:[#allocation5 + $0x1b0] sm:$0xff]  ;;  %v2352_v17 = vpack.c.bf16 %v230_v10, %v214_v9  ;;  %v217_v18 = vld [vmem:[#allocation5 + $0x238] sm:$0xff] }
  0xb5   :  { %2341 = vmatpush1.bf16.msra.mxu1 %v2340_v1  ;;  %v233_v19 = vld [vmem:[#allocation5 + $0x2b8] sm:$0xff]  ;;  %v2354_v20 = vpack.c.bf16 %v263_v12, %v247_v11  ;;  %v246_v21 = vld [vmem:[#allocation5 + $0x320] sm:$0xff]  ;;  %v155_v23 = vld [vmem:[#allocation5 + $0x48] sm:$0xff]  ;;  %v2364_v25 = vpack.c.bf16 %v200_v16, %v184_v15 }
  0xb6   :  { %2213 = vmatmul.mubr.msk.f32.vlgmr.msra.gmra.mrb[0].mxu0 %vm274_vm0, %v3447_v55  ;;  %2359 = vmatprep.subr.bf16.mxu1 %v2358_v2  ;;  %v262_v22 = vld [vmem:[#allocation5 + $0x3a0] sm:$0xff]  ;;  %v171_v24 = vld [vmem:[#allocation5 + $0xc8] sm:$0xff]  ;;  %v2366_v26 = vpack.c.bf16 %v233_v19, %v217_v18  ;;  %v216_v27 = vld [vmem:[#allocation5 + $0x230] sm:$0xff] }
  0xb7   :  { %2345 = vmatpush1.bf16.msra.mxu0 %v2344_v56  ;;  %484 = vmatprep.mubr.f32.mxu0 %v3278_v0  ;;  %v232_v28 = vld [vmem:[#allocation5 + $0x2b0] sm:$0xff]  ;;  %v2356_v29 = vpack.c.bf16 %v262_v22, %v246_v21  ;;  %v249_v30 = vld [vmem:[#allocation5 + $0x338] sm:$0xff]  ;;  %v2374_v32 = vpack.c.bf16 %v171_v24, %v155_v23  ;;  %v154_v33 = vld [vmem:[#allocation5 + $0x40] sm:$0xff] }
  0xb8   :  { %2347 = vmatprep.subr.bf16.mxu0 %v2346_v59  ;;  %2214 = vmatmul.mubr.msk.f32.vlgmr.msra.gmra.mrb[0].mxu1 %vm274_vm0, %v3447_v55  ;;  %v265_v31 = vld [vmem:[#allocation5 + $0x3b8] sm:$0xff]  ;;  %v170_v34 = vld [vmem:[#allocation5 + $0xc0] sm:$0xff]  ;;  %v187_v35 = vld [vmem:[#allocation5 + $0x148] sm:$0xff]  ;;  %v2368_v37 = vpack.c.bf16 %v232_v28, %v216_v27 }
  0xb9   :  { %2361 = vmatpush1.bf16.msra.mxu1 %v2360_v13  ;;  %555 = vmatprep.mubr.f32.mxu1 %v3278_v0  ;;  %v203_v36 = vld [vmem:[#allocation5 + $0x1c8] sm:$0xff]  ;;  %v2370_v38 = vpack.c.bf16 %v265_v31, %v249_v30  ;;  %v248_v39 = vld [vmem:[#allocation5 + $0x330] sm:$0xff]  ;;  %v2376_v41 = vpack.c.bf16 %v170_v34, %v154_v33  ;;  %v157_v42 = vld [vmem:[#allocation5 + $0x58] sm:$0xff] }
  0xba   :  { %2363 = vmatprep.subr.bf16.mxu1 %v2362_v14  ;;  %v264_v40 = vld [vmem:[#allocation5 + $0x3b0] sm:$0xff]  ;;  %v173_v43 = vld [vmem:[#allocation5 + $0xd8] sm:$0xff]  ;;  %v2378_v44 = vpack.c.bf16 %v203_v36, %v187_v35  ;;  %v186_v45 = vld [vmem:[#allocation5 + $0x140] sm:$0xff] }
  0xbb   :  { %2349 = vmatpush1.bf16.msra.mxu0 %v2348_v5  ;;  %v202_v46 = vld [vmem:[#allocation5 + $0x1c0] sm:$0xff]  ;;  %v219_v47 = vld [vmem:[#allocation5 + $0x248] sm:$0xff]  ;;  %v2372_v49 = vpack.c.bf16 %v264_v40, %v248_v39  ;;  %v2390_v50 = vpack.c.bf16 %v173_v43, %v157_v42  ;;  %v156_v51 = vld [vmem:[#allocation5 + $0x50] sm:$0xff] }
  0xbc   :  { %2351 = vmatprep.subr.bf16.mxu0 %v2350_v8  ;;  %v235_v48 = vld [vmem:[#allocation5 + $0x2c8] sm:$0xff]  ;;  %v172_v52 = vld [vmem:[#allocation5 + $0xd0] sm:$0xff]  ;;  %v2380_v53 = vpack.c.bf16 %v202_v46, %v186_v45  ;;  %v189_v54 = vld [vmem:[#allocation5 + $0x158] sm:$0xff] }
  0xbd   :  { %2365 = vmatpush1.bf16.msra.mxu1 %v2364_v25  ;;  %v205_v56 = vld [vmem:[#allocation5 + $0x1d8] sm:$0xff]  ;;  %v2382_v57 = vpack.c.bf16 %v235_v48, %v219_v47  ;;  %v218_v58 = vld [vmem:[#allocation5 + $0x240] sm:$0xff]  ;;  %v251_v60 = vld [vmem:[#allocation5 + $0x348] sm:$0xff]  ;;  %v2392_v62 = vpack.c.bf16 %v172_v52, %v156_v51 }
  0xbe   :  { %2367 = vmatprep.subr.bf16.mxu1 %v2366_v26  ;;  %v234_v59 = vld [vmem:[#allocation5 + $0x2c0] sm:$0xff]  ;;  %v267_v61 = vld [vmem:[#allocation5 + $0x3c8] sm:$0xff]  ;;  %v2394_v63 = vpack.c.bf16 %v205_v56, %v189_v54  ;;  %v188_v1 = vld [vmem:[#allocation5 + $0x150] sm:$0xff] }
  0xbf   :  { %2353 = vmatpush1.bf16.msra.mxu0 %v2352_v17  ;;  %v204_v2 = vld [vmem:[#allocation5 + $0x1d0] sm:$0xff]  ;;  %v2384_v3 = vpack.c.bf16 %v234_v59, %v218_v58  ;;  %v221_v4 = vld [vmem:[#allocation5 + $0x258] sm:$0xff]  ;;  %v2386_v6 = vpack.c.bf16 %v267_v61, %v251_v60  ;;  %v250_v7 = vld [vmem:[#allocation5 + $0x340] sm:$0xff] }
  0xc0   :  { %2355 = vmatprep.subr.bf16.mxu0 %v2354_v20  ;;  %v237_v5 = vld [vmem:[#allocation5 + $0x2d8] sm:$0xff]  ;;  %v266_v8 = vld [vmem:[#allocation5 + $0x3c0] sm:$0xff]  ;;  %v159_v9 = vld [vmem:[#allocation5 + $0x68] sm:$0xff]  ;;  %v2396_v11 = vpack.c.bf16 %v204_v2, %v188_v1 }
  0xc1   :  { %2369 = vmatpush1.bf16.msra.mxu1 %v2368_v37  ;;  %v175_v10 = vld [vmem:[#allocation5 + $0xe8] sm:$0xff]  ;;  %v2398_v12 = vpack.c.bf16 %v237_v5, %v221_v4  ;;  %v220_v13 = vld [vmem:[#allocation5 + $0x250] sm:$0xff]  ;;  %v2388_v15 = vpack.c.bf16 %v266_v8, %v250_v7  ;;  %v253_v16 = vld [vmem:[#allocation5 + $0x358] sm:$0xff] }
  0xc2   :  { %2371 = vmatprep.subr.bf16.mxu1 %v2370_v38  ;;  %v236_v14 = vld [vmem:[#allocation5 + $0x2d0] sm:$0xff]  ;;  %v269_v17 = vld [vmem:[#allocation5 + $0x3d8] sm:$0xff]  ;;  %v2406_v18 = vpack.c.bf16 %v175_v10, %v159_v9  ;;  %v158_v19 = vld [vmem:[#allocation5 + $0x60] sm:$0xff] }
  0xc3   :  { %2357 = vmatpush1.bf16.msra.mxu0 %v2356_v29  ;;  %v174_v20 = vld [vmem:[#allocation5 + $0xe0] sm:$0xff]  ;;  %v191_v21 = vld [vmem:[#allocation5 + $0x168] sm:$0xff]  ;;  %v2400_v23 = vpack.c.bf16 %v236_v14, %v220_v13  ;;  %v2402_v24 = vpack.c.bf16 %v269_v17, %v253_v16  ;;  %v252_v25 = vld [vmem:[#allocation5 + $0x350] sm:$0xff] }
  0xc4   :  { %2375 = vmatprep.subr.bf16.mxu0 %v2374_v32  ;;  %v207_v22 = vld [vmem:[#allocation5 + $0x1e8] sm:$0xff]  ;;  %v268_v26 = vld [vmem:[#allocation5 + $0x3d0] sm:$0xff]  ;;  %v2408_v27 = vpack.c.bf16 %v174_v20, %v158_v19  ;;  %v161_v28 = vld [vmem:[#allocation5 + $0x78] sm:$0xff] }
  0xc5   :  { %2373 = vmatpush1.bf16.msra.mxu1 %v2372_v49  ;;  %v177_v29 = vld [vmem:[#allocation5 + $0xf8] sm:$0xff]  ;;  %v2410_v30 = vpack.c.bf16 %v207_v22, %v191_v21  ;;  %v190_v31 = vld [vmem:[#allocation5 + $0x160] sm:$0xff]  ;;  %v223_v33 = vld [vmem:[#allocation5 + $0x268] sm:$0xff]  ;;  %v2404_v35 = vpack.c.bf16 %v268_v26, %v252_v25 }
  0xc6   :  { %2215 = vmatmul.mubr.msk.f32.vlgmr.msra.gmra.mrb[2].mxu0 %vm274_vm0, %v3447_v55  ;;  %2391 = vmatprep.subr.bf16.mxu1 %v2390_v50  ;;  %v206_v32 = vld [vmem:[#allocation5 + $0x1e0] sm:$0xff]  ;;  %v239_v34 = vld [vmem:[#allocation5 + $0x2e8] sm:$0xff]  ;;  %v2422_v36 = vpack.c.bf16 %v177_v29, %v161_v28  ;;  %v160_v37 = vld [vmem:[#allocation5 + $0x70] sm:$0xff] }
  0xc7   :  { %2377 = vmatpush1.bf16.msra.mxu0 %v2376_v41  ;;  %626 = vmatprep.mubr.f32.mxu0 %v3278_v0  ;;  %v176_v38 = vld [vmem:[#allocation5 + $0xf0] sm:$0xff]  ;;  %v2412_v39 = vpack.c.bf16 %v206_v32, %v190_v31  ;;  %v193_v40 = vld [vmem:[#allocation5 + $0x178] sm:$0xff]  ;;  %v2414_v42 = vpack.c.bf16 %v239_v34, %v223_v33  ;;  %v222_v43 = vld [vmem:[#allocation5 + $0x260] sm:$0xff] }
  0xc8   :  { %2379 = vmatprep.subr.bf16.mxu0 %v2378_v44  ;;  %2216 = vmatmul.mubr.msk.f32.vlgmr.msra.gmra.mrb[2].mxu1 %vm274_vm0, %v3447_v55  ;;  %v209_v41 = vld [vmem:[#allocation5 + $0x1f8] sm:$0xff]  ;;  %v238_v44 = vld [vmem:[#allocation5 + $0x2e0] sm:$0xff]  ;;  %v255_v45 = vld [vmem:[#allocation5 + $0x368] sm:$0xff]  ;;  %v2424_v47 = vpack.c.bf16 %v176_v38, %v160_v37 }
  0xc9   :  { %2393 = vmatpush1.bf16.msra.mxu1 %v2392_v62  ;;  %697 = vmatprep.mubr.f32.mxu1 %v3278_v0  ;;  %v271_v46 = vld [vmem:[#allocation5 + $0x3e8] sm:$0xff]  ;;  %v2426_v48 = vpack.c.bf16 %v209_v41, %v193_v40  ;;  %v192_v49 = vld [vmem:[#allocation5 + $0x170] sm:$0xff]  ;;  %v2416_v51 = vpack.c.bf16 %v238_v44, %v222_v43  ;;  %v225_v52 = vld [vmem:[#allocation5 + $0x278] sm:$0xff] }
  0xca   :  { %2395 = vmatprep.subr.bf16.mxu1 %v2394_v63  ;;  %v208_v50 = vld [vmem:[#allocation5 + $0x1f0] sm:$0xff]  ;;  %v2418_v54 = vpack.c.bf16 %v271_v46, %v255_v45  ;;  %v254_v56 = vld [vmem:[#allocation5 + $0x360] sm:$0xff]  ;;  %v257_v2 = vld [vmem:[#allocation5 + $0x378] sm:$0xff] }
  0xcb   :  { %2381 = vmatpush1.bf16.msra.mxu0 %v2380_v53  ;;  %v241_v53 = vld [vmem:[#allocation5 + $0x2f8] sm:$0xff]  ;;  %v2428_v58 = vpack.c.bf16 %v208_v50, %v192_v49  ;;  %v889_v59 = vld [vmem:[#allocation8 + $0x8] sm:$0xff]  ;;  %v888_v5 = vld [vmem:[#allocation8] sm:$0xff] }
  0xcc   :  { %2383 = vmatprep.subr.bf16.mxu0 %v2382_v57  ;;  %v270_v57 = vld [vmem:[#allocation5 + $0x3e0] sm:$0xff]  ;;  %v897_v60 = vld [vmem:[#allocation8 + $0x48] sm:$0xff]  ;;  %v2430_v61 = vpack.c.bf16 %v241_v53, %v225_v52  ;;  %v890_v21 = vld [vmem:[#allocation8 + $0x10] sm:$0xff] }
  0xcd   :  { %2397 = vmatpush1.bf16.msra.mxu1 %v2396_v11  ;;  %v224_v62 = vld [vmem:[#allocation5 + $0x270] sm:$0xff]  ;;  %v2420_v1 = vpack.c.bf16 %v270_v57, %v254_v56  ;;  %v2438_v4 = vpack.c.bf16 %v897_v60, %v889_v59  ;;  %v891_v13 = vld [vmem:[#allocation8 + $0x18] sm:$0xff]  ;;  %v904_v17 = vld [vmem:[#allocation8 + $0x80] sm:$0xff] }
  0xce   :  { %2399 = vmatprep.subr.bf16.mxu1 %v2398_v12  ;;  %v240_v63 = vld [vmem:[#allocation5 + $0x2f0] sm:$0xff]  ;;  %v899_v14 = vld [vmem:[#allocation8 + $0x58] sm:$0xff]  ;;  %v928_v37 = vld [vmem:[#allocation8 + $0x140] sm:$0xff] }
  0xcf   :  { %2385 = vmatpush1.bf16.msra.mxu0 %v2384_v3  ;;  %v273_v3 = vld [vmem:[#allocation5 + $0x3f8] sm:$0xff]  ;;  %v2432_v7 = vpack.c.bf16 %v240_v63, %v224_v62  ;;  %v905_v8 = vld [vmem:[#allocation8 + $0x88] sm:$0xff]  ;;  %v2566_v20 = vpack.c.bf16 %v899_v14, %v891_v13  ;;  %v944_v49 = vld [vmem:[#allocation8 + $0x1c0] sm:$0xff] }
  0xd0   :  { %2387 = vmatprep.subr.bf16.mxu0 %v2386_v6  ;;  %v896_v6 = vld [vmem:[#allocation8 + $0x40] sm:$0xff]  ;;  %v913_v9 = vld [vmem:[#allocation8 + $0xc8] sm:$0xff]  ;;  %v2434_v10 = vpack.c.bf16 %v273_v3, %v257_v2  ;;  %v898_v22 = vld [vmem:[#allocation8 + $0x50] sm:$0xff] }
  0xd1   :  { %2401 = vmatpush1.bf16.msra.mxu1 %v2400_v23  ;;  %v256_v11 = vld [vmem:[#allocation5 + $0x370] sm:$0xff]  ;;  %v2442_v16 = vpack.c.bf16 %v913_v9, %v905_v8  ;;  %v907_v23 = vld [vmem:[#allocation8 + $0x98] sm:$0xff]  ;;  %v2568_v26 = vpack.c.bf16 %v898_v22, %v890_v21  ;;  %v952_v60 = vld [vmem:[#allocation8 + $0x200] sm:$0xff] }
  0xd2   :  { %2403 = vmatprep.subr.bf16.mxu1 %v2402_v24  ;;  %v272_v12 = vld [vmem:[#allocation5 + $0x3f0] sm:$0xff]  ;;  %v915_v24 = vld [vmem:[#allocation8 + $0xd8] sm:$0xff]  ;;  %v960_v62 = vld [vmem:[#allocation8 + $0x240] sm:$0xff] }
  0xd3   :  { %2389 = vmatpush1.bf16.msra.mxu0 %v2388_v15  ;;  %v2440_v15 = vpack.c.bf16 %v896_v6, %v888_v5  ;;  %v2436_v19 = vpack.c.bf16 %v272_v12, %v256_v11  ;;  %v906_v28 = vld [vmem:[#allocation8 + $0x90] sm:$0xff]  ;;  %v921_v31 = vld [vmem:[#allocation8 + $0x108] sm:$0xff]  ;;  %v923_v33 = vld [vmem:[#allocation8 + $0x118] sm:$0xff]  ;;  %v2456_v2 = vpack.c.bf16 %v960_v62, %v952_v60 }
  0xd4   :  { %2407 = vmatprep.subr.bf16.mxu0 %v2406_v18  ;;  %v912_v18 = vld [vmem:[#allocation8 + $0xc0] sm:$0xff]  ;;  %v914_v29 = vld [vmem:[#allocation8 + $0xd0] sm:$0xff]  ;;  %v929_v32 = vld [vmem:[#allocation8 + $0x148] sm:$0xff] }
  0xd5   :  { %2405 = vmatpush1.bf16.msra.mxu1 %v2404_v35  ;;  %v2444_v25 = vpack.c.bf16 %v912_v18, %v904_v17  ;;  %v2446_v34 = vpack.c.bf16 %v929_v32, %v921_v31  ;;  %v931_v35 = vld [vmem:[#allocation8 + $0x158] sm:$0xff]  ;;  %v922_v40 = vld [vmem:[#allocation8 + $0x110] sm:$0xff]  ;;  %v945_v44 = vld [vmem:[#allocation8 + $0x1c8] sm:$0xff] }
  0xd6   :  { %2217 = vmatmul.mubr.msk.f32.vlgmr.msra.gmra.mrb[4].mxu0 %vm274_vm0, %v3447_v55  ;;  %2423 = vmatprep.subr.bf16.mxu1 %v2422_v36  ;;  %v920_v36 = vld [vmem:[#allocation8 + $0x100] sm:$0xff]  ;;  %v2574_v38 = vpack.c.bf16 %v931_v35, %v923_v33  ;;  %v930_v41 = vld [vmem:[#allocation8 + $0x150] sm:$0xff]  ;;  %v947_v45 = vld [vmem:[#allocation8 + $0x1d8] sm:$0xff] }
  0xd7   :  { %2409 = vmatpush1.bf16.msra.mxu0 %v2408_v27  ;;  %768 = vmatprep.mubr.f32.mxu0 %v3278_v0  ;;  %v2570_v27 = vpack.c.bf16 %v915_v24, %v907_v23  ;;  %v2576_v43 = vpack.c.bf16 %v930_v41, %v922_v40  ;;  %v938_v50 = vld [vmem:[#allocation8 + $0x190] sm:$0xff]  ;;  %v953_v53 = vld [vmem:[#allocation8 + $0x208] sm:$0xff]  ;;  %v963_v59 = vld [vmem:[#allocation8 + $0x258] sm:$0xff] }
  0xd8   :  { %2411 = vmatprep.subr.bf16.mxu0 %v2410_v30  ;;  %2218 = vmatmul.mubr.msk.f32.vlgmr.msra.gmra.mrb[4].mxu1 %vm274_vm0, %v3447_v55  ;;  %v2572_v30 = vpack.c.bf16 %v914_v29, %v906_v28  ;;  %v946_v52 = vld [vmem:[#allocation8 + $0x1d0] sm:$0xff]  ;;  %v969_v3 = vld [vmem:[#allocation8 + $0x288] sm:$0xff]  ;;  %v971_v5 = vld [vmem:[#allocation8 + $0x298] sm:$0xff] }
  0xd9   :  { %2425 = vmatpush1.bf16.msra.mxu1 %v2424_v47  ;;  %839 = vmatprep.mubr.f32.mxu1 %v3278_v0  ;;  %v2580_v56 = vpack.c.bf16 %v946_v52, %v938_v50  ;;  %v954_v63 = vld [vmem:[#allocation8 + $0x210] sm:$0xff]  ;;  %v979_v8 = vld [vmem:[#allocation8 + $0x2d8] sm:$0xff]  ;;  %v968_v9 = vld [vmem:[#allocation8 + $0x280] sm:$0xff] }
  0xda   :  { %2427 = vmatprep.subr.bf16.mxu1 %v2426_v48  ;;  %v936_v48 = vld [vmem:[#allocation8 + $0x180] sm:$0xff]  ;;  %v2586_v11 = vpack.c.bf16 %v979_v8, %v971_v5  ;;  %v970_v12 = vld [vmem:[#allocation8 + $0x290] sm:$0xff]  ;;  %v993_v17 = vld [vmem:[#allocation8 + $0x348] sm:$0xff] }
  0xdb   :  { %2413 = vmatpush1.bf16.msra.mxu0 %v2412_v39  ;;  %v2448_v39 = vpack.c.bf16 %v928_v37, %v920_v36  ;;  %v978_v13 = vld [vmem:[#allocation8 + $0x2d0] sm:$0xff]  ;;  %v987_v18 = vld [vmem:[#allocation8 + $0x318] sm:$0xff]  ;;  %v984_v21 = vld [vmem:[#allocation8 + $0x300] sm:$0xff] }
  0xdc   :  { %2415 = vmatprep.subr.bf16.mxu0 %v2414_v42  ;;  %v937_v42 = vld [vmem:[#allocation8 + $0x188] sm:$0xff]  ;;  %v992_v22 = vld [vmem:[#allocation8 + $0x340] sm:$0xff]  ;;  %v1011_v32 = vld [vmem:[#allocation8 + $0x3d8] sm:$0xff] }
  0xdd   :  { %2429 = vmatpush1.bf16.msra.mxu1 %v2428_v58  ;;  %v2450_v46 = vpack.c.bf16 %v945_v44, %v937_v42  ;;  %v955_v58 = vld [vmem:[#allocation8 + $0x218] sm:$0xff]  ;;  %v2464_v24 = vpack.c.bf16 %v992_v22, %v984_v21  ;;  %v1001_v28 = vld [vmem:[#allocation8 + $0x388] sm:$0xff]  ;;  %v1000_v33 = vld [vmem:[#allocation8 + $0x380] sm:$0xff] }
  0xde   :  { %2431 = vmatprep.subr.bf16.mxu1 %v2430_v61  ;;  %v2582_v61 = vpack.c.bf16 %v963_v59, %v955_v58  ;;  %v1009_v29 = vld [vmem:[#allocation8 + $0x3c8] sm:$0xff]  ;;  %v1002_v37 = vld [vmem:[#allocation8 + $0x390] sm:$0xff]  ;;  %v1019_v42 = vld [vmem:[#allocation8 + $0x418] sm:$0xff] }
  0xdf   :  { %2417 = vmatpush1.bf16.msra.mxu0 %v2416_v51  ;;  %v2452_v51 = vpack.c.bf16 %v944_v49, %v936_v48  ;;  %v2466_v31 = vpack.c.bf16 %v1009_v29, %v1001_v28  ;;  %v1025_v41 = vld [vmem:[#allocation8 + $0x448] sm:$0xff]  ;;  %v1026_v49 = vld [vmem:[#allocation8 + $0x450] sm:$0xff]  ;;  %v1040_v59 = vld [vmem:[#allocation8 + $0x4c0] sm:$0xff] }
  0xe0   :  { %2419 = vmatprep.subr.bf16.mxu0 %v2418_v54  ;;  %v961_v54 = vld [vmem:[#allocation8 + $0x248] sm:$0xff]  ;;  %v1034_v60 = vld [vmem:[#allocation8 + $0x490] sm:$0xff]  ;;  %v1059_v5 = vld [vmem:[#allocation8 + $0x558] sm:$0xff] }
  0xe1   :  { %2433 = vmatpush1.bf16.msra.mxu1 %v2432_v7  ;;  %v2454_v57 = vpack.c.bf16 %v961_v54, %v953_v53  ;;  %v1033_v50 = vld [vmem:[#allocation8 + $0x488] sm:$0xff]  ;;  %v1035_v54 = vld [vmem:[#allocation8 + $0x498] sm:$0xff]  ;;  %v1066_v21 = vld [vmem:[#allocation8 + $0x590] sm:$0xff] }
  0xe2   :  { %2435 = vmatprep.subr.bf16.mxu1 %v2434_v10  ;;  %v976_v10 = vld [vmem:[#allocation8 + $0x2c0] sm:$0xff]  ;;  %v1083_v28 = vld [vmem:[#allocation8 + $0x618] sm:$0xff] }
  0xe3   :  { %2421 = vmatpush1.bf16.msra.mxu0 %v2420_v1  ;;  %v962_v1 = vld [vmem:[#allocation8 + $0x250] sm:$0xff]  ;;  %v2460_v14 = vpack.c.bf16 %v976_v10, %v968_v9  ;;  %v1091_v29 = vld [vmem:[#allocation8 + $0x658] sm:$0xff] }
  0xe4   :  { %2439 = vmatprep.subr.bf16.mxu0 %v2438_v4  ;;  %v977_v4 = vld [vmem:[#allocation8 + $0x2c8] sm:$0xff]  ;;  %v2584_v6 = vpack.c.bf16 %v962_v1, %v954_v63  ;;  %v1050_v10 = vld [vmem:[#allocation8 + $0x510] sm:$0xff] }
  0xe5   :  { %2437 = vmatpush1.bf16.msra.mxu1 %v2436_v19  ;;  %v2458_v7 = vpack.c.bf16 %v977_v4, %v969_v3  ;;  %v1049_v1 = vld [vmem:[#allocation8 + $0x508] sm:$0xff]  ;;  %v1051_v3 = vld [vmem:[#allocation8 + $0x518] sm:$0xff] }
  0xe6   :  { %2219 = vmatmul.mubr.msk.f32.vlgmr.msra.gmra.mrb[6].mxu0 %vm274_vm0, %v3447_v55  ;;  %2567 = vmatprep.subr.bf16.mxu1 %v2566_v20  ;;  %v995_v20 = vld [vmem:[#allocation8 + $0x358] sm:$0xff]  ;;  %v2606_v8 = vpack.c.bf16 %v1059_v5, %v1051_v3  ;;  %v1128_v3 = vld [vmem:[#allocation8 + $0x780] sm:$0xff] }
  0xe7   :  { %2441 = vmatpush1.bf16.msra.mxu0 %v2440_v15  ;;  %v2588_v15 = vpack.c.bf16 %v978_v13, %v970_v12  ;;  %v2590_v23 = vpack.c.bf16 %v995_v20, %v987_v18  ;;  %v1065_v12 = vld [vmem:[#allocation8 + $0x588] sm:$0xff]  ;;  %v1072_v20 = vld [vmem:[#allocation8 + $0x5c0] sm:$0xff] }
  0xe8   :  { %2443 = vmatprep.subr.bf16.mxu0 %v2442_v16  ;;  %2220 = vmatmul.mubr.msk.f32.vlgmr.msra.gmra.mrb[6].mxu1 %vm274_vm0, %v3447_v55  ;;  %v939_v55 = vld [vmem:[#allocation8 + $0x198] sm:$0xff]  ;;  %v985_v16 = vld [vmem:[#allocation8 + $0x308] sm:$0xff] }
  0xe9   :  { %2569 = vmatpush1.bf16.msra.mxu1 %v2568_v26  ;;  %v2578_v47 = vpack.c.bf16 %v947_v45, %v939_v55  ;;  %v2462_v19 = vpack.c.bf16 %v993_v17, %v985_v16  ;;  %v994_v26 = vld [vmem:[#allocation8 + $0x350] sm:$0xff]  ;;  %v1016_v45 = vld [vmem:[#allocation8 + $0x400] sm:$0xff]  ;;  %v1075_v16 = vld [vmem:[#allocation8 + $0x5d8] sm:$0xff] }
  0xea   :  { %2571 = vmatprep.subr.bf16.mxu1 %v2570_v27 }
  0xeb   :  { %2445 = vmatpush1.bf16.msra.mxu0 %v2444_v25  ;;  %v986_v25 = vld [vmem:[#allocation8 + $0x310] sm:$0xff] }
  0xec   :  { %2447 = vmatprep.subr.bf16.mxu0 %v2446_v34  ;;  %v2592_v27 = vpack.c.bf16 %v994_v26, %v986_v25  ;;  %v1008_v34 = vld [vmem:[#allocation8 + $0x3c0] sm:$0xff]  ;;  %v1089_v25 = vld [vmem:[#allocation8 + $0x648] sm:$0xff] }
  0xed   :  { %2573 = vmatpush1.bf16.msra.mxu1 %v2572_v30  ;;  %v1003_v30 = vld [vmem:[#allocation8 + $0x398] sm:$0xff]  ;;  %v2468_v36 = vpack.c.bf16 %v1008_v34, %v1000_v33  ;;  %v1082_v33 = vld [vmem:[#allocation8 + $0x610] sm:$0xff] }
  0xee   :  { %2575 = vmatprep.subr.bf16.mxu1 %v2574_v38  ;;  %v2594_v35 = vpack.c.bf16 %v1011_v32, %v1003_v30  ;;  %v1010_v38 = vld [vmem:[#allocation8 + $0x3d0] sm:$0xff]  ;;  %v1080_v30 = vld [vmem:[#allocation8 + $0x600] sm:$0xff] }
  0xef   :  { %2449 = vmatpush1.bf16.msra.mxu0 %v2448_v39  ;;  %v1017_v39 = vld [vmem:[#allocation8 + $0x408] sm:$0xff]  ;;  %v2596_v40 = vpack.c.bf16 %v1010_v38, %v1002_v37  ;;  %v1088_v32 = vld [vmem:[#allocation8 + $0x640] sm:$0xff]  ;;  %v1090_v34 = vld [vmem:[#allocation8 + $0x650] sm:$0xff] }
  0xf0   :  { %2451 = vmatprep.subr.bf16.mxu0 %v2450_v46  ;;  %v2470_v44 = vpack.c.bf16 %v1025_v41, %v1017_v39  ;;  %v1024_v46 = vld [vmem:[#allocation8 + $0x440] sm:$0xff]  ;;  %v1105_v37 = vld [vmem:[#allocation8 + $0x6c8] sm:$0xff]  ;;  %v1099_v38 = vld [vmem:[#allocation8 + $0x698] sm:$0xff]  ;;  %v2616_v39 = vpack.c.bf16 %v1090_v34, %v1082_v33 }
  0xf1   :  { %2577 = vmatpush1.bf16.msra.mxu1 %v2576_v43  ;;  %v1027_v43 = vld [vmem:[#allocation8 + $0x458] sm:$0xff]  ;;  %v2472_v48 = vpack.c.bf16 %v1024_v46, %v1016_v45  ;;  %v1106_v45 = vld [vmem:[#allocation8 + $0x6d0] sm:$0xff] }
  0xf2   :  { %2579 = vmatprep.subr.bf16.mxu1 %v2578_v47  ;;  %v2598_v55 = vpack.c.bf16 %v1027_v43, %v1019_v42  ;;  %v1018_v47 = vld [vmem:[#allocation8 + $0x410] sm:$0xff]  ;;  %v1107_v41 = vld [vmem:[#allocation8 + $0x6d8] sm:$0xff]  ;;  %v1096_v42 = vld [vmem:[#allocation8 + $0x680] sm:$0xff] }
  0xf3   :  { %2453 = vmatpush1.bf16.msra.mxu0 %v2452_v51  ;;  %v1041_v51 = vld [vmem:[#allocation8 + $0x4c8] sm:$0xff]  ;;  %v2600_v52 = vpack.c.bf16 %v1026_v49, %v1018_v47  ;;  %v1104_v43 = vld [vmem:[#allocation8 + $0x6c0] sm:$0xff] }
  0xf4   :  { %2455 = vmatprep.subr.bf16.mxu0 %v2454_v57  ;;  %v2474_v53 = vpack.c.bf16 %v1041_v51, %v1033_v50  ;;  %v1032_v57 = vld [vmem:[#allocation8 + $0x480] sm:$0xff]  ;;  %v2492_v46 = vpack.c.bf16 %v1104_v43, %v1096_v42  ;;  %v1121_v49 = vld [vmem:[#allocation8 + $0x748] sm:$0xff]  ;;  %v1115_v50 = vld [vmem:[#allocation8 + $0x718] sm:$0xff] }
  0xf5   :  { %2581 = vmatpush1.bf16.msra.mxu1 %v2580_v56  ;;  %v1043_v56 = vld [vmem:[#allocation8 + $0x4d8] sm:$0xff]  ;;  %v2476_v62 = vpack.c.bf16 %v1040_v59, %v1032_v57  ;;  %v1122_v59 = vld [vmem:[#allocation8 + $0x750] sm:$0xff] }
  0xf6   :  { %2583 = vmatprep.subr.bf16.mxu1 %v2582_v61  ;;  %v2602_v58 = vpack.c.bf16 %v1043_v56, %v1035_v54  ;;  %v1042_v61 = vld [vmem:[#allocation8 + $0x4d0] sm:$0xff]  ;;  %v1120_v54 = vld [vmem:[#allocation8 + $0x740] sm:$0xff] }
  0xf7   :  { %2457 = vmatpush1.bf16.msra.mxu0 %v2456_v2  ;;  %v2604_v63 = vpack.c.bf16 %v1042_v61, %v1034_v60  ;;  %v1057_v2 = vld [vmem:[#allocation8 + $0x548] sm:$0xff] }
  0xf8   :  { %2459 = vmatprep.subr.bf16.mxu0 %v2458_v7  ;;  %v2478_v4 = vpack.c.bf16 %v1057_v2, %v1049_v1  ;;  %v1056_v7 = vld [vmem:[#allocation8 + $0x540] sm:$0xff]  ;;  %v1129_v61 = vld [vmem:[#allocation8 + $0x788] sm:$0xff]  ;;  %v1139_v2 = vld [vmem:[#allocation8 + $0x7d8] sm:$0xff] }
  0xf9   :  { %2585 = vmatpush1.bf16.msra.mxu1 %v2584_v6  ;;  %v1048_v6 = vld [vmem:[#allocation8 + $0x500] sm:$0xff] }
  0xfa   :  { %2587 = vmatprep.subr.bf16.mxu1 %v2586_v11  ;;  %v2480_v9 = vpack.c.bf16 %v1056_v7, %v1048_v6  ;;  %v1058_v11 = vld [vmem:[#allocation8 + $0x550] sm:$0xff] }
  0xfb   :  { %2461 = vmatpush1.bf16.msra.mxu0 %v2460_v14  ;;  %v2608_v13 = vpack.c.bf16 %v1058_v11, %v1050_v10  ;;  %v1073_v14 = vld [vmem:[#allocation8 + $0x5c8] sm:$0xff]  ;;  %v1130_v7 = vld [vmem:[#allocation8 + $0x790] sm:$0xff] }
  0xfc   :  { %2463 = vmatprep.subr.bf16.mxu0 %v2462_v19  ;;  %v2482_v17 = vpack.c.bf16 %v1073_v14, %v1065_v12  ;;  %v1064_v19 = vld [vmem:[#allocation8 + $0x580] sm:$0xff]  ;;  %v1145_v10 = vld [vmem:[#allocation8 + $0x808] sm:$0xff]  ;;  %v1147_v12 = vld [vmem:[#allocation8 + $0x818] sm:$0xff] }
  0xfd   :  { %2589 = vmatpush1.bf16.msra.mxu1 %v2588_v15  ;;  %v1067_v15 = vld [vmem:[#allocation8 + $0x598] sm:$0xff]  ;;  %v2484_v22 = vpack.c.bf16 %v1072_v20, %v1064_v19  ;;  %v1153_v11 = vld [vmem:[#allocation8 + $0x848] sm:$0xff] }
  0xfe   :  { %2591 = vmatprep.subr.bf16.mxu1 %v2590_v23  ;;  %v2610_v18 = vpack.c.bf16 %v1075_v16, %v1067_v15  ;;  %v1074_v23 = vld [vmem:[#allocation8 + $0x5d0] sm:$0xff]  ;;  %v1155_v14 = vld [vmem:[#allocation8 + $0x858] sm:$0xff]  ;;  %v860_v16 = vlaneseq }
  0xff   :  { %2465 = vmatpush1.bf16.msra.mxu0 %v2464_v24  ;;  %v1081_v24 = vld [vmem:[#allocation8 + $0x608] sm:$0xff]  ;;  %v2612_v26 = vpack.c.bf16 %v1074_v23, %v1066_v21  ;;  %v2630_v15 = vpack.c.bf16 %v1155_v14, %v1147_v12  ;;  %v858_v19 = vld [vmem:[#allocation7] sm:$0xf] }
 0x100   :  { %2467 = vmatprep.subr.bf16.mxu0 %v2466_v31  ;;  %v2614_v31 = vpack.c.bf16 %v1091_v29, %v1083_v28  ;;  %v1179_v14 = vld [vmem:[#allocation8 + $0x918] sm:$0xff] }
 0x101   :  { %2593 = vmatpush1.bf16.msra.mxu1 %v2592_v27  ;;  %v2486_v27 = vpack.c.bf16 %v1089_v25, %v1081_v24 }
 0x102   :  { %2595 = vmatprep.subr.bf16.mxu1 %v2594_v35  ;;  %v2488_v35 = vpack.c.bf16 %v1088_v32, %v1080_v30 }
 0x103   :  { %2469 = vmatpush1.bf16.msra.mxu0 %v2468_v36  ;;  %v1097_v36 = vld [vmem:[#allocation8 + $0x688] sm:$0xff] }
 0x104   :  { %2471 = vmatprep.subr.bf16.mxu0 %v2470_v44  ;;  %v2618_v44 = vpack.c.bf16 %v1107_v41, %v1099_v38 }
 0x105   :  { %2597 = vmatpush1.bf16.msra.mxu1 %v2596_v40  ;;  %v2490_v40 = vpack.c.bf16 %v1105_v37, %v1097_v36 }
 0x106   :  { %2599 = vmatprep.subr.bf16.mxu1 %v2598_v55  ;;  %v1098_v55 = vld [vmem:[#allocation8 + $0x690] sm:$0xff] }
 0x107   :  { %2473 = vmatpush1.bf16.msra.mxu0 %v2472_v48  ;;  %v2620_v47 = vpack.c.bf16 %v1106_v45, %v1098_v55  ;;  %v1113_v48 = vld [vmem:[#allocation8 + $0x708] sm:$0xff] }
 0x108   :  { %2475 = vmatprep.subr.bf16.mxu0 %v2474_v53  ;;  %v2494_v51 = vpack.c.bf16 %v1121_v49, %v1113_v48  ;;  %v1112_v53 = vld [vmem:[#allocation8 + $0x700] sm:$0xff] }
 0x109   :  { %2601 = vmatpush1.bf16.msra.mxu1 %v2600_v52  ;;  %v1123_v52 = vld [vmem:[#allocation8 + $0x758] sm:$0xff]  ;;  %v2496_v57 = vpack.c.bf16 %v1120_v54, %v1112_v53  ;;  %v1169_v54 = vld [vmem:[#allocation8 + $0x8c8] sm:$0xff] }
 0x10a   :  { %2603 = vmatprep.subr.bf16.mxu1 %v2602_v58  ;;  %v2622_v56 = vpack.c.bf16 %v1123_v52, %v1115_v50  ;;  %v1114_v58 = vld [vmem:[#allocation8 + $0x710] sm:$0xff]  ;;  %v1161_v52 = vld [vmem:[#allocation8 + $0x888] sm:$0xff] }
 0x10b   :  { %2477 = vmatpush1.bf16.msra.mxu0 %v2476_v62  ;;  %v2624_v60 = vpack.c.bf16 %v1122_v59, %v1114_v58  ;;  %v1137_v62 = vld [vmem:[#allocation8 + $0x7c8] sm:$0xff]  ;;  %v1146_v50 = vld [vmem:[#allocation8 + $0x810] sm:$0xff] }
 0x10c   :  { %2479 = vmatprep.subr.bf16.mxu0 %v2478_v4  ;;  %v2498_v1 = vpack.c.bf16 %v1137_v62, %v1129_v61  ;;  %v1136_v4 = vld [vmem:[#allocation8 + $0x7c0] sm:$0xff] }
 0x10d   :  { %2605 = vmatpush1.bf16.msra.mxu1 %v2604_v63  ;;  %v1131_v63 = vld [vmem:[#allocation8 + $0x798] sm:$0xff]  ;;  %v2500_v6 = vpack.c.bf16 %v1136_v4, %v1128_v3 }
 0x10e   :  { %2607 = vmatprep.subr.bf16.mxu1 %v2606_v8  ;;  %v2626_v5 = vpack.c.bf16 %v1139_v2, %v1131_v63  ;;  %v1138_v8 = vld [vmem:[#allocation8 + $0x7d0] sm:$0xff]  ;;  %v1168_v2 = vld [vmem:[#allocation8 + $0x8c0] sm:$0xff] }
 0x10f   :  { %2481 = vmatpush1.bf16.msra.mxu0 %v2480_v9  ;;  %v2628_v9 = vpack.c.bf16 %v1138_v8, %v1130_v7  ;;  %v1162_v8 = vld [vmem:[#allocation8 + $0x890] sm:$0xff] }
 0x110   :  { %2483 = vmatprep.subr.bf16.mxu0 %v2482_v17  ;;  %v3471_v17 = vshrl.u32 %v860_v16, 7 }
 0x111   :  { %2609 = vmatpush1.bf16.msra.mxu1 %v2608_v13  ;;  %v2502_v13 = vpack.c.bf16 %v1153_v11, %v1145_v10  ;;  %v1177_v11 = vld [vmem:[#allocation8 + $0x908] sm:$0xff] }
 0x112   :  { %2611 = vmatprep.subr.bf16.mxu1 %v2610_v18  ;;  %v870_v18 = vsub.s32 2, %v3471_v17  ;;  %v862_v37 = vsub.s32 0, %v3471_v17  ;;  %v866_v38 = vsub.s32 1, %v3471_v17  ;;  %v874_v48 = vsub.s32 3, %v3471_v17 }
 0x113   :  { %2485 = vmatpush1.bf16.msra.mxu0 %v2484_v22 }
 0x114   :  { %2487 = vmatprep.subr.bf16.mxu0 %v2486_v27  ;;  %v3474_v20 = vrot.slane %v858_v19, %v870_v18  ;;  %v863_v41 = vrot.slane %v858_v19, %v862_v37  ;;  %v875_v4 = vrot.slane %v858_v19, %v874_v48  ;;  %v1216_v48 = vld [vmem:[#allocation8 + $0xa40] sm:$0xff] }
 0x115   :  { %2613 = vmatpush1.bf16.msra.mxu1 %v2612_v26 }
 0x116   :  { %2615 = vmatprep.subr.bf16.mxu1 %v2614_v31 }
 0x117   :  { %2489 = vmatpush1.bf16.msra.mxu0 %v2488_v35 }
 0x118   :  { %2491 = vmatprep.subr.bf16.mxu0 %v2490_v40 }
 0x119   :  { %2617 = vmatpush1.bf16.msra.mxu1 %v2616_v39 }
 0x11a   :  { %2619 = vmatprep.subr.bf16.mxu1 %v2618_v44  ;;  %v867_v44 = vrot.slane %v858_v19, %v866_v38 }
 0x11b   :  { %2493 = vmatpush1.bf16.msra.mxu0 %v2492_v46  ;;  %v1144_v46 = vld [vmem:[#allocation8 + $0x800] sm:$0xff] }
 0x11c   :  { %2495 = vmatprep.subr.bf16.mxu0 %v2494_v51  ;;  %v1154_v51 = vld [vmem:[#allocation8 + $0x850] sm:$0xff] }
 0x11d   :  { %2621 = vmatpush1.bf16.msra.mxu1 %v2620_v47  ;;  %v1152_v47 = vld [vmem:[#allocation8 + $0x840] sm:$0xff]  ;;  %v2632_v63 = vpack.c.bf16 %v1154_v51, %v1146_v50  ;;  %v1210_v51 = vld [vmem:[#allocation8 + $0xa10] sm:$0xff] }
 0x11e   :  { %2623 = vmatprep.subr.bf16.mxu1 %v2622_v56  ;;  %v1163_v56 = vld [vmem:[#allocation8 + $0x898] sm:$0xff]  ;;  %v2504_v59 = vpack.c.bf16 %v1152_v47, %v1144_v46  ;;  %v1208_v47 = vld [vmem:[#allocation8 + $0xa00] sm:$0xff] }
 0x11f   :  { %2497 = vmatpush1.bf16.msra.mxu0 %v2496_v57  ;;  %v1171_v57 = vld [vmem:[#allocation8 + $0x8d8] sm:$0xff] }
 0x120   :  { %2499 = vmatprep.subr.bf16.mxu0 %v2498_v1  ;;  %v1160_v1 = vld [vmem:[#allocation8 + $0x880] sm:$0xff]  ;;  %v2634_v7 = vpack.c.bf16 %v1171_v57, %v1163_v56  ;;  %v1227_v56 = vld [vmem:[#allocation8 + $0xa98] sm:$0xff] }
 0x121   :  { %2625 = vmatpush1.bf16.msra.mxu1 %v2624_v60  ;;  %v2508_v18 = vpack.c.bf16 %v1168_v2, %v1160_v1  ;;  %v1235_v57 = vld [vmem:[#allocation8 + $0xad8] sm:$0xff]  ;;  %v1226_v2 = vld [vmem:[#allocation8 + $0xa90] sm:$0xff] }
 0x122   :  { %2627 = vmatprep.subr.bf16.mxu1 %v2626_v5  ;;  %v2650_v1 = vpack.c.bf16 %v1235_v57, %v1227_v56  ;;  %v1290_v56 = vld [vmem:[#allocation8 + $0xc90] sm:$0xff] }
 0x123   :  { %2501 = vmatpush1.bf16.msra.mxu0 %v2500_v6  ;;  %v2506_v6 = vpack.c.bf16 %v1169_v54, %v1161_v52  ;;  %v1218_v52 = vld [vmem:[#allocation8 + $0xa50] sm:$0xff]  ;;  %v1233_v54 = vld [vmem:[#allocation8 + $0xac8] sm:$0xff] }
 0x124   :  { %2503 = vmatprep.subr.bf16.mxu0 %v2502_v13  ;;  %v1185_v13 = vld [vmem:[#allocation8 + $0x948] sm:$0xff]  ;;  %v1298_v57 = vld [vmem:[#allocation8 + $0xcd0] sm:$0xff] }
 0x125   :  { %2629 = vmatpush1.bf16.msra.mxu1 %v2628_v9  ;;  %v1170_v9 = vld [vmem:[#allocation8 + $0x8d0] sm:$0xff] }
 0x126   :  { %2631 = vmatprep.subr.bf16.mxu1 %v2630_v15  ;;  %v1187_v15 = vld [vmem:[#allocation8 + $0x958] sm:$0xff]  ;;  %v2636_v19 = vpack.c.bf16 %v1170_v9, %v1162_v8 }
 0x127   :  { %v1251_v8 = vld [vmem:[#allocation8 + $0xb58] sm:$0xff] }
 0x189   :  { %v344_v21 = vpop.f32.mrb[0].mxu0 }
 0x18a   :  { %v346_v22 = vpop.f32.mrb[1].mxu0 }
 0x18b   :  { %v415_v23 = vpop.f32.mrb[0].mxu1 }
 0x18c   :  { %v417_v24 = vpop.f32.mrb[1].mxu1 }
 0x199   :  { %v486_v25 = vpop.f32.mrb[2].mxu0 }
 0x19a   :  { %v846_v26 = vmax.f32 %v344_v21, %v486_v25  ;;  %v488_v27 = vpop.f32.mrb[3].mxu0  ;;  %v2638_v25 = vpack.c.bf16 %v1187_v15, %v1179_v14  ;;  %v1242_v15 = vld [vmem:[#allocation8 + $0xb10] sm:$0xff] }
 0x19b   :  { %v847_v28 = vmax.f32 %v346_v22, %v488_v27  ;;  %v557_v29 = vpop.f32.mrb[2].mxu1  ;;  %v1176_v22 = vld [vmem:[#allocation8 + $0x900] sm:$0xff]  ;;  %v1186_v27 = vld [vmem:[#allocation8 + $0x950] sm:$0xff] }
 0x19c   :  { %v848_v30 = vmax.f32 %v415_v23, %v557_v29  ;;  %v559_v31 = vpop.f32.mrb[3].mxu1  ;;  %v1184_v23 = vld [vmem:[#allocation8 + $0x940] sm:$0xff] }
 0x19d   :  { %v849_v32 = vmax.f32 %v417_v24, %v559_v31  ;;  %v2510_v24 = vpack.c.bf16 %v1185_v13, %v1177_v11  ;;  %v1195_v31 = vld [vmem:[#allocation8 + $0x998] sm:$0xff]  ;;  %v1240_v11 = vld [vmem:[#allocation8 + $0xb00] sm:$0xff] }
 0x1a9   :  { %v628_v33 = vpop.f32.mrb[4].mxu0 }
 0x1aa   :  { %v630_v34 = vpop.f32.mrb[5].mxu0 }
 0x1ab   :  { %v699_v35 = vpop.f32.mrb[4].mxu1 }
 0x1ac   :  { %v701_v36 = vpop.f32.mrb[5].mxu1 }
 0x1b9   :  { %v770_v39 = vpop.f32.mrb[6].mxu0 }
 0x1ba   :  { %v850_v40 = vmax.f32 %v628_v33, %v770_v39  ;;  %v772_v42 = vpop.f32.mrb[7].mxu0 }
 0x1bb   :  { %v851_v43 = vmax.f32 %v630_v34, %v772_v42  ;;  %v841_v58 = vpop.f32.mrb[6].mxu1  ;;  %v1192_v34 = vld [vmem:[#allocation8 + $0x980] sm:$0xff]  ;;  %v1209_v42 = vld [vmem:[#allocation8 + $0xa08] sm:$0xff] }
 0x1bc   :  { %v854_v55 = vmax.f32 %v846_v26, %v850_v40  ;;  %v852_v60 = vmax.f32 %v699_v35, %v841_v58  ;;  %v843_v61 = vpop.f32.mrb[7].mxu1  ;;  %v1178_v26 = vld [vmem:[#allocation8 + $0x910] sm:$0xff]  ;;  %v1200_v35 = vld [vmem:[#allocation8 + $0x9c0] sm:$0xff]  ;;  %v2520_v58 = vpack.c.bf16 %v1216_v48, %v1208_v47  ;;  %v1291_v47 = vld [vmem:[#allocation8 + $0xc98] sm:$0xff] }
 0x1bd   :  { %v855_v45 = vmax.f32 %v847_v28, %v851_v43  ;;  %v853_v3 = vmax.f32 %v701_v36, %v843_v61  ;;  %v1193_v28 = vld [vmem:[#allocation8 + $0x988] sm:$0xff]  ;;  %v2640_v33 = vpack.c.bf16 %v1186_v27, %v1178_v26  ;;  %v1194_v40 = vld [vmem:[#allocation8 + $0x990] sm:$0xff]  ;;  %v1232_v61 = vld [vmem:[#allocation8 + $0xac0] sm:$0xff] }
 0x1be   :  { %v880_v49 = vadd.f32 %v863_v41, %v854_v55  ;;  %v856_v10 = vmax.f32 %v848_v30, %v852_v60  ;;  %v1201_v30 = vld [vmem:[#allocation8 + $0x9c8] sm:$0xff]  ;;  %v1202_v41 = vld [vmem:[#allocation8 + $0x9d0] sm:$0xff]  ;;  %v1219_v55 = vld [vmem:[#allocation8 + $0xa58] sm:$0xff] }
 0x1bf   :  { %v881_v53 = vadd.f32 %v867_v44, %v855_v45  ;;  %v857_v12 = vmax.f32 %v849_v32, %v853_v3  ;;  %v2512_v32 = vpack.c.bf16 %v1184_v23, %v1176_v22  ;;  %v2514_v36 = vpack.c.bf16 %v1201_v30, %v1193_v28  ;;  %v1217_v43 = vld [vmem:[#allocation8 + $0xa48] sm:$0xff]  ;;  %v1211_v44 = vld [vmem:[#allocation8 + $0xa18] sm:$0xff]  ;;  %v1224_v60 = vld [vmem:[#allocation8 + $0xa80] sm:$0xff] }
 0x1c0   :  { %v3485_v5 = vmax.f32 %v880_v49, 0.0  ;;  %v3492_v16 = vadd.f32 %v3474_v20, %v856_v10  ;;  %v1203_v20 = vld [vmem:[#allocation8 + $0x9d8] sm:$0xff]  ;;  %v2516_v45 = vpack.c.bf16 %v1200_v35, %v1192_v34  ;;  %v2644_v46 = vpack.c.bf16 %v1202_v41, %v1194_v40  ;;  %v1234_v3 = vld [vmem:[#allocation8 + $0xad0] sm:$0xff]  ;;  %v1256_v26 = vld [vmem:[#allocation8 + $0xb80] sm:$0xff] }
 0x1c1   :  { %v3483_v62 = vmax.f32 %v881_v53, 0.0  ;;  %v883_v21 = vadd.f32 %v875_v4, %v857_v12  ;;  %v2642_v39 = vpack.c.bf16 %v1203_v20, %v1195_v31  ;;  %v2518_v49 = vpack.c.bf16 %v1217_v43, %v1209_v42  ;;  %v1225_v53 = vld [vmem:[#allocation8 + $0xa88] sm:$0xff]  ;;  %v1248_v12 = vld [vmem:[#allocation8 + $0xb40] sm:$0xff]  ;;  %v1259_v22 = vld [vmem:[#allocation8 + $0xb98] sm:$0xff] }
 0x1c2   :  { %v2646_v50 = vpack.c.bf16 %v1219_v55, %v1211_v44  ;;  %v1241_v4 = vld [vmem:[#allocation8 + $0xb08] sm:$0xff]  ;;  %v2524_v9 = vpack.c.bf16 %v1232_v61, %v1224_v60  ;;  %v2652_v10 = vpack.c.bf16 %v1234_v3, %v1226_v2  ;;  %v1267_v23 = vld [vmem:[#allocation8 + $0xbd8] sm:$0xff]  ;;  %v1264_v27 = vld [vmem:[#allocation8 + $0xbc0] sm:$0xff] }
 0x1c3   :  { %1464 = vmatprep.mubr.f32.mxu0 %v3483_v62  ;;  %1606 = vmatprep.mubr.f32.mxu1 %v3483_v62  ;;  %v3494_v29 = vmax.f32 %v883_v21, 0.0  ;;  %v1265_v21 = vld [vmem:[#allocation8 + $0xbc8] sm:$0xff]  ;;  %v2658_v30 = vpack.c.bf16 %v1267_v23, %v1259_v22  ;;  %v1258_v31 = vld [vmem:[#allocation8 + $0xb90] sm:$0xff]  ;;  %v1275_v34 = vld [vmem:[#allocation8 + $0xc18] sm:$0xff] }
 0x1c4   :  { %1465 = vmatmul.mubr.f32.vlgmr.msra.gmra.mrb[8].mxu0 %v3485_v5  ;;  %1607 = vmatmul.mubr.f32.vlgmr.msra.gmra.mrb[8].mxu1 %v3485_v5  ;;  %v1266_v20 = vld [vmem:[#allocation8 + $0xbd0] sm:$0xff]  ;;  %v1283_v35 = vld [vmem:[#allocation8 + $0xc58] sm:$0xff]  ;;  %v1272_v40 = vld [vmem:[#allocation8 + $0xc00] sm:$0xff] }
 0x1c5   :  { %2505 = vmatpush1.bf16.msra.mxu0 %v2504_v59  ;;  %2633 = vmatpush1.bf16.msra.mxu1 %v2632_v63  ;;  %v2648_v59 = vpack.c.bf16 %v1218_v52, %v1210_v51  ;;  %v2522_v63 = vpack.c.bf16 %v1233_v54, %v1225_v53  ;;  %v1280_v41 = vld [vmem:[#allocation8 + $0xc40] sm:$0xff]  ;;  %v2662_v43 = vpack.c.bf16 %v1283_v35, %v1275_v34  ;;  %v1274_v44 = vld [vmem:[#allocation8 + $0xc10] sm:$0xff]  ;;  %v1299_v48 = vld [vmem:[#allocation8 + $0xcd8] sm:$0xff] }
 0x1c6   :  { %2507 = vmatprep.subr.bf16.mxu0 %v2506_v6  ;;  %2635 = vmatprep.subr.bf16.mxu1 %v2634_v7  ;;  %v1249_v6 = vld [vmem:[#allocation8 + $0xb48] sm:$0xff]  ;;  %v1243_v7 = vld [vmem:[#allocation8 + $0xb18] sm:$0xff]  ;;  %v1282_v55 = vld [vmem:[#allocation8 + $0xc50] sm:$0xff]  ;;  %v2666_v54 = vpack.c.bf16 %v1299_v48, %v1291_v47 }
 0x1c7   :  { %1535 = vmatprep.mubr.f32.mxu0 %v3494_v29  ;;  %1677 = vmatprep.mubr.f32.mxu1 %v3494_v29  ;;  %v2526_v13 = vpack.c.bf16 %v1249_v6, %v1241_v4  ;;  %v2654_v14 = vpack.c.bf16 %v1251_v8, %v1243_v7  ;;  %v1288_v51 = vld [vmem:[#allocation8 + $0xc80] sm:$0xff]  ;;  %v1307_v60 = vld [vmem:[#allocation8 + $0xd18] sm:$0xff]  ;;  %v1306_v7 = vld [vmem:[#allocation8 + $0xd10] sm:$0xff] }
 0x1c8   :  { %v1296_v52 = vld [vmem:[#allocation8 + $0xcc0] sm:$0xff]  ;;  %v1315_v61 = vld [vmem:[#allocation8 + $0xd58] sm:$0xff]  ;;  %v1314_v8 = vld [vmem:[#allocation8 + $0xd50] sm:$0xff] }
 0x1c9   :  { %2509 = vmatpush1.bf16.msra.mxu0 %v2508_v18  ;;  %2637 = vmatpush1.bf16.msra.mxu1 %v2636_v19  ;;  %v1250_v18 = vld [vmem:[#allocation8 + $0xb50] sm:$0xff]  ;;  %v1257_v19 = vld [vmem:[#allocation8 + $0xb88] sm:$0xff]  ;;  %v1304_v2 = vld [vmem:[#allocation8 + $0xd00] sm:$0xff]  ;;  %v2670_v6 = vpack.c.bf16 %v1315_v61, %v1307_v60 }
 0x1ca   :  { %2511 = vmatprep.subr.bf16.mxu0 %v2510_v24  ;;  %2639 = vmatprep.subr.bf16.mxu1 %v2638_v25  ;;  %v2528_v24 = vpack.c.bf16 %v1248_v12, %v1240_v11  ;;  %v2656_v25 = vpack.c.bf16 %v1250_v18, %v1242_v15  ;;  %v2530_v28 = vpack.c.bf16 %v1265_v21, %v1257_v19  ;;  %v1312_v3 = vld [vmem:[#allocation8 + $0xd40] sm:$0xff]  ;;  %v1323_v11 = vld [vmem:[#allocation8 + $0xd98] sm:$0xff]  ;;  %v1322_v22 = vld [vmem:[#allocation8 + $0xd90] sm:$0xff] }
 0x1cb   :  { %v1331_v12 = vld [vmem:[#allocation8 + $0xdd8] sm:$0xff]  ;;  %v1320_v15 = vld [vmem:[#allocation8 + $0xd80] sm:$0xff]  ;;  %v1330_v23 = vld [vmem:[#allocation8 + $0xdd0] sm:$0xff] }
 0x1cc   :  { %v1328_v18 = vld [vmem:[#allocation8 + $0xdc0] sm:$0xff]  ;;  %v2674_v21 = vpack.c.bf16 %v1331_v12, %v1323_v11  ;;  %v1338_v34 = vld [vmem:[#allocation8 + $0xe10] sm:$0xff] }
 0x1cd   :  { %2513 = vmatpush1.bf16.msra.mxu0 %v2512_v32  ;;  %2641 = vmatpush1.bf16.msra.mxu1 %v2640_v33  ;;  %v1273_v32 = vld [vmem:[#allocation8 + $0xc08] sm:$0xff]  ;;  %v1346_v35 = vld [vmem:[#allocation8 + $0xe50] sm:$0xff] }
 0x1ce   :  { %2515 = vmatprep.subr.bf16.mxu0 %v2514_v36  ;;  %2643 = vmatprep.subr.bf16.mxu1 %v2642_v39  ;;  %v1281_v33 = vld [vmem:[#allocation8 + $0xc48] sm:$0xff]  ;;  %v2532_v36 = vpack.c.bf16 %v1264_v27, %v1256_v26  ;;  %v2660_v39 = vpack.c.bf16 %v1266_v20, %v1258_v31  ;;  %v1339_v26 = vld [vmem:[#allocation8 + $0xe18] sm:$0xff]  ;;  %v1336_v31 = vld [vmem:[#allocation8 + $0xe00] sm:$0xff] }
 0x1cf   :  { %v2534_v42 = vpack.c.bf16 %v1281_v33, %v1273_v32  ;;  %v1347_v27 = vld [vmem:[#allocation8 + $0xe58] sm:$0xff]  ;;  %v1344_v20 = vld [vmem:[#allocation8 + $0xe40] sm:$0xff]  ;;  %v1354_v47 = vld [vmem:[#allocation8 + $0xe90] sm:$0xff] }
 0x1d0   :  { %v2678_v33 = vpack.c.bf16 %v1347_v27, %v1339_v26  ;;  %v1362_v48 = vld [vmem:[#allocation8 + $0xed0] sm:$0xff] }
 0x1d1   :  { %2517 = vmatpush1.bf16.msra.mxu0 %v2516_v45  ;;  %2645 = vmatpush1.bf16.msra.mxu1 %v2644_v46  ;;  %v1289_v45 = vld [vmem:[#allocation8 + $0xc88] sm:$0xff]  ;;  %v1370_v60 = vld [vmem:[#allocation8 + $0xf10] sm:$0xff] }
 0x1d2   :  { %2519 = vmatprep.subr.bf16.mxu0 %v2518_v49  ;;  %2647 = vmatprep.subr.bf16.mxu1 %v2646_v50  ;;  %v1297_v46 = vld [vmem:[#allocation8 + $0xcc8] sm:$0xff]  ;;  %v2536_v49 = vpack.c.bf16 %v1280_v41, %v1272_v40  ;;  %v2664_v50 = vpack.c.bf16 %v1282_v55, %v1274_v44  ;;  %v1355_v40 = vld [vmem:[#allocation8 + $0xe98] sm:$0xff]  ;;  %v1352_v44 = vld [vmem:[#allocation8 + $0xe80] sm:$0xff] }
 0x1d3   :  { %v2538_v53 = vpack.c.bf16 %v1297_v46, %v1289_v45  ;;  %v1363_v41 = vld [vmem:[#allocation8 + $0xed8] sm:$0xff]  ;;  %v1360_v55 = vld [vmem:[#allocation8 + $0xec0] sm:$0xff]  ;;  %v1378_v61 = vld [vmem:[#allocation8 + $0xf50] sm:$0xff] }
 0x1d4   :  { %v2682_v46 = vpack.c.bf16 %v1363_v41, %v1355_v40  ;;  %v1386_v11 = vld [vmem:[#allocation8 + $0xf90] sm:$0xff] }
 0x1d5   :  { %2521 = vmatpush1.bf16.msra.mxu0 %v2520_v58  ;;  %2649 = vmatpush1.bf16.msra.mxu1 %v2648_v59  ;;  %v1305_v58 = vld [vmem:[#allocation8 + $0xd08] sm:$0xff]  ;;  %v1394_v12 = vld [vmem:[#allocation8 + $0xfd0] sm:$0xff] }
 0x1d6   :  { %2523 = vmatprep.subr.bf16.mxu0 %v2522_v63  ;;  %2651 = vmatprep.subr.bf16.mxu1 %v2650_v1  ;;  %v1313_v59 = vld [vmem:[#allocation8 + $0xd48] sm:$0xff]  ;;  %v2540_v63 = vpack.c.bf16 %v1296_v52, %v1288_v51  ;;  %v2668_v1 = vpack.c.bf16 %v1298_v57, %v1290_v56  ;;  %v1371_v51 = vld [vmem:[#allocation8 + $0xf18] sm:$0xff]  ;;  %v1368_v56 = vld [vmem:[#allocation8 + $0xf00] sm:$0xff] }
 0x1d7   :  { %v2542_v4 = vpack.c.bf16 %v1313_v59, %v1305_v58  ;;  %v1379_v52 = vld [vmem:[#allocation8 + $0xf58] sm:$0xff]  ;;  %v1376_v57 = vld [vmem:[#allocation8 + $0xf40] sm:$0xff]  ;;  %v894_v26 = vld [vmem:[#allocation8 + $0x30] sm:$0xff] }
 0x1d8   :  { %v2686_v59 = vpack.c.bf16 %v1379_v52, %v1371_v51  ;;  %v902_v27 = vld [vmem:[#allocation8 + $0x70] sm:$0xff] }
 0x1d9   :  { %2525 = vmatpush1.bf16.msra.mxu0 %v2524_v9  ;;  %2653 = vmatpush1.bf16.msra.mxu1 %v2652_v10  ;;  %v1321_v9 = vld [vmem:[#allocation8 + $0xd88] sm:$0xff]  ;;  %v934_v52 = vld [vmem:[#allocation8 + $0x170] sm:$0xff] }
 0x1da   :  { %2527 = vmatprep.subr.bf16.mxu0 %v2526_v13  ;;  %2655 = vmatprep.subr.bf16.mxu1 %v2654_v14  ;;  %v1329_v10 = vld [vmem:[#allocation8 + $0xdc8] sm:$0xff]  ;;  %v2544_v13 = vpack.c.bf16 %v1312_v3, %v1304_v2  ;;  %v2672_v14 = vpack.c.bf16 %v1314_v8, %v1306_v7  ;;  %v1387_v2 = vld [vmem:[#allocation8 + $0xf98] sm:$0xff]  ;;  %v1384_v7 = vld [vmem:[#allocation8 + $0xf80] sm:$0xff] }
 0x1db   :  { %v2546_v19 = vpack.c.bf16 %v1329_v10, %v1321_v9  ;;  %v1395_v3 = vld [vmem:[#allocation8 + $0xfd8] sm:$0xff]  ;;  %v1392_v8 = vld [vmem:[#allocation8 + $0xfc0] sm:$0xff] }
 0x1dc   :  { %v2690_v10 = vpack.c.bf16 %v1395_v3, %v1387_v2  ;;  %v950_v2 = vld [vmem:[#allocation8 + $0x1f0] sm:$0xff]  ;;  %v957_v3 = vld [vmem:[#allocation8 + $0x228] sm:$0xff] }
 0x1dd   :  { %2529 = vmatpush1.bf16.msra.mxu0 %v2528_v24  ;;  %2657 = vmatpush1.bf16.msra.mxu1 %v2656_v25  ;;  %v1337_v24 = vld [vmem:[#allocation8 + $0xe08] sm:$0xff] }
 0x1de   :  { %2531 = vmatprep.subr.bf16.mxu0 %v2530_v28  ;;  %2659 = vmatprep.subr.bf16.mxu1 %v2658_v30  ;;  %v1345_v25 = vld [vmem:[#allocation8 + $0xe48] sm:$0xff]  ;;  %v2548_v28 = vpack.c.bf16 %v1328_v18, %v1320_v15  ;;  %v2676_v30 = vpack.c.bf16 %v1330_v23, %v1322_v22  ;;  %v895_v15 = vld [vmem:[#allocation8 + $0x38] sm:$0xff] }
 0x1df   :  { %v2550_v32 = vpack.c.bf16 %v1345_v25, %v1337_v24  ;;  %v903_v18 = vld [vmem:[#allocation8 + $0x78] sm:$0xff]  ;;  %v892_v24 = vld [vmem:[#allocation8 + $0x20] sm:$0xff] }
 0x1e0   :  { %v2822_v23 = vpack.c.bf16 %v903_v18, %v895_v15  ;;  %v900_v25 = vld [vmem:[#allocation8 + $0x60] sm:$0xff]  ;;  %v966_v15 = vld [vmem:[#allocation8 + $0x270] sm:$0xff]  ;;  %v973_v18 = vld [vmem:[#allocation8 + $0x2a8] sm:$0xff] }
 0x1e1   :  { %2533 = vmatpush1.bf16.msra.mxu0 %v2532_v36  ;;  %2661 = vmatpush1.bf16.msra.mxu1 %v2660_v39  ;;  %v1353_v36 = vld [vmem:[#allocation8 + $0xe88] sm:$0xff] }
 0x1e2   :  { %2535 = vmatprep.subr.bf16.mxu0 %v2534_v42  ;;  %2663 = vmatprep.subr.bf16.mxu1 %v2662_v43  ;;  %v1361_v39 = vld [vmem:[#allocation8 + $0xec8] sm:$0xff]  ;;  %v2552_v42 = vpack.c.bf16 %v1344_v20, %v1336_v31  ;;  %v2680_v43 = vpack.c.bf16 %v1346_v35, %v1338_v34  ;;  %v911_v31 = vld [vmem:[#allocation8 + $0xb8] sm:$0xff]  ;;  %v2824_v34 = vpack.c.bf16 %v902_v27, %v894_v26  ;;  %v908_v35 = vld [vmem:[#allocation8 + $0xa0] sm:$0xff] }
 0x1e3   :  { %v2554_v45 = vpack.c.bf16 %v1361_v39, %v1353_v36  ;;  %v919_v20 = vld [vmem:[#allocation8 + $0xf8] sm:$0xff]  ;;  %v916_v36 = vld [vmem:[#allocation8 + $0xe0] sm:$0xff]  ;;  %v910_v39 = vld [vmem:[#allocation8 + $0xb0] sm:$0xff] }
 0x1e4   :  { %v2826_v41 = vpack.c.bf16 %v919_v20, %v911_v31  ;;  %v972_v26 = vld [vmem:[#allocation8 + $0x2a0] sm:$0xff]  ;;  %v982_v31 = vld [vmem:[#allocation8 + $0x2f0] sm:$0xff]  ;;  %v989_v20 = vld [vmem:[#allocation8 + $0x328] sm:$0xff] }
 0x1e5   :  { %2537 = vmatpush1.bf16.msra.mxu0 %v2536_v49  ;;  %2665 = vmatpush1.bf16.msra.mxu1 %v2664_v50  ;;  %v1369_v49 = vld [vmem:[#allocation8 + $0xf08] sm:$0xff]  ;;  %v980_v27 = vld [vmem:[#allocation8 + $0x2e0] sm:$0xff] }
 0x1e6   :  { %2539 = vmatprep.subr.bf16.mxu0 %v2538_v53  ;;  %2667 = vmatprep.subr.bf16.mxu1 %v2666_v54  ;;  %v1377_v50 = vld [vmem:[#allocation8 + $0xf48] sm:$0xff]  ;;  %v2556_v53 = vpack.c.bf16 %v1360_v55, %v1352_v44  ;;  %v2684_v54 = vpack.c.bf16 %v1362_v48, %v1354_v47  ;;  %v927_v55 = vld [vmem:[#allocation8 + $0x138] sm:$0xff]  ;;  %v924_v48 = vld [vmem:[#allocation8 + $0x120] sm:$0xff] }
 0x1e7   :  { %v2558_v58 = vpack.c.bf16 %v1377_v50, %v1369_v49  ;;  %v933_v44 = vld [vmem:[#allocation8 + $0x168] sm:$0xff]  ;;  %v932_v49 = vld [vmem:[#allocation8 + $0x160] sm:$0xff]  ;;  %v926_v50 = vld [vmem:[#allocation8 + $0x130] sm:$0xff] }
 0x1e9   :  { %2541 = vmatpush1.bf16.msra.mxu0 %v2540_v63  ;;  %2669 = vmatpush1.bf16.msra.mxu1 %v2668_v1  ;;  %v1385_v63 = vld [vmem:[#allocation8 + $0xf88] sm:$0xff] }
 0x1ea   :  { %2543 = vmatprep.subr.bf16.mxu0 %v2542_v4  ;;  %2671 = vmatprep.subr.bf16.mxu1 %v2670_v6  ;;  %v1393_v1 = vld [vmem:[#allocation8 + $0xfc8] sm:$0xff]  ;;  %v2560_v4 = vpack.c.bf16 %v1376_v57, %v1368_v56  ;;  %v2688_v6 = vpack.c.bf16 %v1378_v61, %v1370_v60  ;;  %v943_v56 = vld [vmem:[#allocation8 + $0x1b8] sm:$0xff]  ;;  %v948_v61 = vld [vmem:[#allocation8 + $0x1e0] sm:$0xff] }
 0x1eb   :  { %v2562_v9 = vpack.c.bf16 %v1393_v1, %v1385_v63  ;;  %v951_v57 = vld [vmem:[#allocation8 + $0x1f8] sm:$0xff]  ;;  %v942_v63 = vld [vmem:[#allocation8 + $0x1b0] sm:$0xff] }
 0x1ec   :  { %v2834_v1 = vpack.c.bf16 %v951_v57, %v943_v56  ;;  %v1014_v56 = vld [vmem:[#allocation8 + $0x3f0] sm:$0xff]  ;;  %v1021_v57 = vld [vmem:[#allocation8 + $0x428] sm:$0xff] }
 0x1ed   :  { %2545 = vmatpush1.bf16.msra.mxu0 %v2544_v13  ;;  %2673 = vmatpush1.bf16.msra.mxu1 %v2672_v14  ;;  %v893_v13 = vld [vmem:[#allocation8 + $0x28] sm:$0xff] }
 0x1ee   :  { %2547 = vmatprep.subr.bf16.mxu0 %v2546_v19  ;;  %2675 = vmatprep.subr.bf16.mxu1 %v2674_v21  ;;  %v901_v14 = vld [vmem:[#allocation8 + $0x68] sm:$0xff]  ;;  %v2564_v19 = vpack.c.bf16 %v1392_v8, %v1384_v7  ;;  %v2692_v21 = vpack.c.bf16 %v1394_v12, %v1386_v11  ;;  %v967_v7 = vld [vmem:[#allocation8 + $0x278] sm:$0xff]  ;;  %v956_v11 = vld [vmem:[#allocation8 + $0x220] sm:$0xff] }
 0x1ef   :  { %v2694_v22 = vpack.c.bf16 %v901_v14, %v893_v13  ;;  %v964_v12 = vld [vmem:[#allocation8 + $0x260] sm:$0xff]  ;;  %v958_v13 = vld [vmem:[#allocation8 + $0x230] sm:$0xff] }
 0x1f1   :  { %2549 = vmatpush1.bf16.msra.mxu0 %v2548_v28  ;;  %2677 = vmatpush1.bf16.msra.mxu1 %v2676_v30  ;;  %v909_v28 = vld [vmem:[#allocation8 + $0xa8] sm:$0xff] }
 0x1f2   :  { %2551 = vmatprep.subr.bf16.mxu0 %v2550_v32  ;;  %2679 = vmatprep.subr.bf16.mxu1 %v2678_v33  ;;  %v917_v30 = vld [vmem:[#allocation8 + $0xe8] sm:$0xff]  ;;  %v2696_v32 = vpack.c.bf16 %v900_v25, %v892_v24  ;;  %v3499_v33 = vmax.f32 %v3492_v16, 0.0  ;;  %v2700_v16 = vpack.c.bf16 %v916_v36, %v908_v35  ;;  %v2840_v24 = vpack.c.bf16 %v966_v15, %v958_v13  ;;  %v999_v35 = vld [vmem:[#allocation8 + $0x378] sm:$0xff]  ;;  %v1044_v15 = vld [vmem:[#allocation8 + $0x4e0] sm:$0xff] }
 0x1f3   :  { %v2698_v40 = vpack.c.bf16 %v917_v30, %v909_v28  ;;  %v974_v28 = vld [vmem:[#allocation8 + $0x2b0] sm:$0xff]  ;;  %v2716_v36 = vpack.c.bf16 %v980_v27, %v972_v26 }
 0x1f5   :  { %2553 = vmatpush1.bf16.msra.mxu0 %v2552_v42  ;;  %2681 = vmatpush1.bf16.msra.mxu1 %v2680_v43  ;;  %v918_v42 = vld [vmem:[#allocation8 + $0xf0] sm:$0xff]  ;;  %v925_v43 = vld [vmem:[#allocation8 + $0x128] sm:$0xff] }
 0x1f6   :  { %2555 = vmatprep.subr.bf16.mxu0 %v2554_v45  ;;  %2683 = vmatprep.subr.bf16.mxu1 %v2682_v46  ;;  %v935_v45 = vld [vmem:[#allocation8 + $0x178] sm:$0xff]  ;;  %v2828_v46 = vpack.c.bf16 %v918_v42, %v910_v39  ;;  %v2702_v47 = vpack.c.bf16 %v933_v44, %v925_v43  ;;  %v2844_v39 = vpack.c.bf16 %v982_v31, %v974_v28  ;;  %v996_v42 = vld [vmem:[#allocation8 + $0x360] sm:$0xff]  ;;  %v990_v43 = vld [vmem:[#allocation8 + $0x330] sm:$0xff] }
 0x1f7   :  { %v2830_v51 = vpack.c.bf16 %v935_v45, %v927_v55  ;;  %v998_v55 = vld [vmem:[#allocation8 + $0x370] sm:$0xff]  ;;  %v1005_v45 = vld [vmem:[#allocation8 + $0x3a8] sm:$0xff]  ;;  %v1060_v31 = vld [vmem:[#allocation8 + $0x560] sm:$0xff] }
 0x1f9   :  { %2557 = vmatpush1.bf16.msra.mxu0 %v2556_v53  ;;  %2685 = vmatpush1.bf16.msra.mxu1 %v2684_v54  ;;  %v941_v53 = vld [vmem:[#allocation8 + $0x1a8] sm:$0xff] }
 0x1fa   :  { %2559 = vmatprep.subr.bf16.mxu0 %v2558_v58  ;;  %2687 = vmatprep.subr.bf16.mxu1 %v2686_v59  ;;  %v949_v54 = vld [vmem:[#allocation8 + $0x1e8] sm:$0xff]  ;;  %v2704_v58 = vpack.c.bf16 %v932_v49, %v924_v48  ;;  %v2832_v59 = vpack.c.bf16 %v934_v52, %v926_v50  ;;  %v2848_v49 = vpack.c.bf16 %v998_v55, %v990_v43  ;;  %v1012_v52 = vld [vmem:[#allocation8 + $0x3e0] sm:$0xff] }
 0x1fb   :  { %v2706_v60 = vpack.c.bf16 %v949_v54, %v941_v53  ;;  %v1006_v53 = vld [vmem:[#allocation8 + $0x3b0] sm:$0xff]  ;;  %v1076_v55 = vld [vmem:[#allocation8 + $0x5e0] sm:$0xff] }
 0x1fd   :  { %2561 = vmatpush1.bf16.msra.mxu0 %v2560_v4  ;;  %2689 = vmatpush1.bf16.msra.mxu1 %v2688_v6  ;;  %v965_v4 = vld [vmem:[#allocation8 + $0x268] sm:$0xff]  ;;  %v959_v6 = vld [vmem:[#allocation8 + $0x238] sm:$0xff] }
 0x1fe   :  { %2563 = vmatprep.subr.bf16.mxu0 %v2562_v9  ;;  %2691 = vmatprep.subr.bf16.mxu1 %v2690_v10  ;;  %v2836_v9 = vpack.c.bf16 %v950_v2, %v942_v63  ;;  %v2710_v10 = vpack.c.bf16 %v965_v4, %v957_v3  ;;  %v2838_v14 = vpack.c.bf16 %v967_v7, %v959_v6  ;;  %v1028_v2 = vld [vmem:[#allocation8 + $0x460] sm:$0xff]  ;;  %v1022_v3 = vld [vmem:[#allocation8 + $0x430] sm:$0xff]  ;;  %v1037_v7 = vld [vmem:[#allocation8 + $0x4a8] sm:$0xff] }
 0x1ff   :  { %v1030_v6 = vld [vmem:[#allocation8 + $0x470] sm:$0xff] }
 0x201   :  { %2565 = vmatpush1.bf16.msra.mxu0 %v2564_v19  ;;  %2693 = vmatpush1.bf16.msra.mxu1 %v2692_v21  ;;  %v981_v19 = vld [vmem:[#allocation8 + $0x2e8] sm:$0xff]  ;;  %v975_v21 = vld [vmem:[#allocation8 + $0x2b8] sm:$0xff] }
 0x202   :  { %2695 = vmatprep.subr.bf16.mxu0 %v2694_v22  ;;  %2823 = vmatprep.subr.bf16.mxu1 %v2822_v23  ;;  %v983_v22 = vld [vmem:[#allocation8 + $0x2f8] sm:$0xff]  ;;  %v2712_v23 = vpack.c.bf16 %v964_v12, %v956_v11  ;;  %v2714_v25 = vpack.c.bf16 %v981_v19, %v973_v18  ;;  %v2856_v12 = vpack.c.bf16 %v1030_v6, %v1022_v3  ;;  %v1038_v18 = vld [vmem:[#allocation8 + $0x4b0] sm:$0xff]  ;;  %v1108_v6 = vld [vmem:[#allocation8 + $0x6e0] sm:$0xff] }
 0x203   :  { %v2842_v30 = vpack.c.bf16 %v983_v22, %v975_v21  ;;  %v1046_v21 = vld [vmem:[#allocation8 + $0x4f0] sm:$0xff]  ;;  %v1053_v22 = vld [vmem:[#allocation8 + $0x528] sm:$0xff] }
 0x204   :  { %1536 = vmatmul.mubr.f32.vlgmr.msra.gmra.mrb[8].mxu0 %v3499_v33  ;;  %1678 = vmatmul.mubr.f32.vlgmr.msra.gmra.mrb[8].mxu1 %v3499_v33  ;;  %v2860_v27 = vpack.c.bf16 %v1046_v21, %v1038_v18  ;;  %v1124_v21 = vld [vmem:[#allocation8 + $0x760] sm:$0xff] }
 0x205   :  { %2697 = vmatpush1.bf16.msra.mxu0 %v2696_v32  ;;  %1748 = vmatprep.mubr.f32.mxu0 %v3483_v62  ;;  %v997_v32 = vld [vmem:[#allocation8 + $0x368] sm:$0xff] }
 0x206   :  { %2825 = vmatpush1.bf16.msra.mxu1 %v2824_v34  ;;  %1890 = vmatprep.mubr.f32.mxu1 %v3483_v62  ;;  %v940_v62 = vld [vmem:[#allocation8 + $0x1a0] sm:$0xff]  ;;  %v991_v34 = vld [vmem:[#allocation8 + $0x338] sm:$0xff] }
 0x207   :  { %2699 = vmatprep.subr.bf16.mxu0 %v2698_v40  ;;  %2827 = vmatprep.subr.bf16.mxu1 %v2826_v41  ;;  %v2708_v8 = vpack.c.bf16 %v948_v61, %v940_v62  ;;  %v2718_v40 = vpack.c.bf16 %v997_v32, %v989_v20  ;;  %v988_v41 = vld [vmem:[#allocation8 + $0x320] sm:$0xff]  ;;  %v2846_v44 = vpack.c.bf16 %v999_v35, %v991_v34  ;;  %v1054_v20 = vld [vmem:[#allocation8 + $0x530] sm:$0xff]  ;;  %v1069_v35 = vld [vmem:[#allocation8 + $0x5a8] sm:$0xff] }
 0x208   :  { %v2720_v48 = vpack.c.bf16 %v996_v42, %v988_v41  ;;  %v2852_v61 = vpack.c.bf16 %v1014_v56, %v1006_v53  ;;  %v1062_v34 = vld [vmem:[#allocation8 + $0x570] sm:$0xff]  ;;  %v1092_v56 = vld [vmem:[#allocation8 + $0x660] sm:$0xff] }
 0x209   :  { %2701 = vmatpush1.bf16.msra.mxu0 %v2700_v16  ;;  %v1013_v16 = vld [vmem:[#allocation8 + $0x3e8] sm:$0xff]  ;;  %v2864_v42 = vpack.c.bf16 %v1062_v34, %v1054_v20  ;;  %v1140_v34 = vld [vmem:[#allocation8 + $0x7e0] sm:$0xff] }
 0x20a   :  { %2829 = vmatpush1.bf16.msra.mxu1 %v2828_v46  ;;  %2703 = vmatprep.subr.bf16.mxu0 %v2702_v47  ;;  %v1007_v46 = vld [vmem:[#allocation8 + $0x3b8] sm:$0xff]  ;;  %v2722_v50 = vpack.c.bf16 %v1013_v16, %v1005_v45  ;;  %v1070_v45 = vld [vmem:[#allocation8 + $0x5b0] sm:$0xff] }
 0x20b   :  { %2831 = vmatprep.subr.bf16.mxu1 %v2830_v51  ;;  %v1015_v47 = vld [vmem:[#allocation8 + $0x3f8] sm:$0xff]  ;;  %v1004_v51 = vld [vmem:[#allocation8 + $0x3a0] sm:$0xff] }
 0x20c   :  { %v2850_v54 = vpack.c.bf16 %v1015_v47, %v1007_v46  ;;  %v2724_v62 = vpack.c.bf16 %v1012_v52, %v1004_v51  ;;  %v1078_v46 = vld [vmem:[#allocation8 + $0x5f0] sm:$0xff]  ;;  %v1085_v47 = vld [vmem:[#allocation8 + $0x628] sm:$0xff] }
 0x20d   :  { %2705 = vmatpush1.bf16.msra.mxu0 %v2704_v58  ;;  %v1029_v58 = vld [vmem:[#allocation8 + $0x468] sm:$0xff]  ;;  %v2868_v52 = vpack.c.bf16 %v1078_v46, %v1070_v45  ;;  %v1156_v46 = vld [vmem:[#allocation8 + $0x860] sm:$0xff] }
 0x20e   :  { %2833 = vmatpush1.bf16.msra.mxu1 %v2832_v59  ;;  %2707 = vmatprep.subr.bf16.mxu0 %v2706_v60  ;;  %v1023_v59 = vld [vmem:[#allocation8 + $0x438] sm:$0xff]  ;;  %v2726_v63 = vpack.c.bf16 %v1029_v58, %v1021_v57  ;;  %v1086_v57 = vld [vmem:[#allocation8 + $0x630] sm:$0xff] }
 0x20f   :  { %2835 = vmatprep.subr.bf16.mxu1 %v2834_v1  ;;  %v1031_v60 = vld [vmem:[#allocation8 + $0x478] sm:$0xff]  ;;  %v1020_v1 = vld [vmem:[#allocation8 + $0x420] sm:$0xff] }
 0x210   :  { %v2854_v4 = vpack.c.bf16 %v1031_v60, %v1023_v59  ;;  %v2728_v11 = vpack.c.bf16 %v1028_v2, %v1020_v1  ;;  %v1094_v59 = vld [vmem:[#allocation8 + $0x670] sm:$0xff]  ;;  %v1101_v60 = vld [vmem:[#allocation8 + $0x6a8] sm:$0xff] }
 0x211   :  { %2709 = vmatpush1.bf16.msra.mxu0 %v2708_v8  ;;  %v1045_v8 = vld [vmem:[#allocation8 + $0x4e8] sm:$0xff]  ;;  %v2872_v2 = vpack.c.bf16 %v1094_v59, %v1086_v57  ;;  %v1164_v57 = vld [vmem:[#allocation8 + $0x8a0] sm:$0xff]  ;;  %v1166_v59 = vld [vmem:[#allocation8 + $0x8b0] sm:$0xff] }
 0x212   :  { %2837 = vmatpush1.bf16.msra.mxu1 %v2836_v9  ;;  %2711 = vmatprep.subr.bf16.mxu0 %v2710_v10  ;;  %v1039_v9 = vld [vmem:[#allocation8 + $0x4b8] sm:$0xff]  ;;  %v2730_v13 = vpack.c.bf16 %v1045_v8, %v1037_v7  ;;  %v1102_v7 = vld [vmem:[#allocation8 + $0x6b0] sm:$0xff] }
 0x213   :  { %2839 = vmatprep.subr.bf16.mxu1 %v2838_v14  ;;  %v1047_v10 = vld [vmem:[#allocation8 + $0x4f8] sm:$0xff]  ;;  %v1036_v14 = vld [vmem:[#allocation8 + $0x4a0] sm:$0xff] }
 0x214   :  { %v2858_v19 = vpack.c.bf16 %v1047_v10, %v1039_v9  ;;  %v2732_v26 = vpack.c.bf16 %v1044_v15, %v1036_v14  ;;  %v1110_v9 = vld [vmem:[#allocation8 + $0x6f0] sm:$0xff]  ;;  %v1117_v10 = vld [vmem:[#allocation8 + $0x728] sm:$0xff] }
 0x215   :  { %2713 = vmatpush1.bf16.msra.mxu0 %v2712_v23  ;;  %v1061_v23 = vld [vmem:[#allocation8 + $0x568] sm:$0xff]  ;;  %v2876_v15 = vpack.c.bf16 %v1110_v9, %v1102_v7  ;;  %v1188_v9 = vld [vmem:[#allocation8 + $0x960] sm:$0xff] }
 0x216   :  { %2841 = vmatpush1.bf16.msra.mxu1 %v2840_v24  ;;  %2715 = vmatprep.subr.bf16.mxu0 %v2714_v25  ;;  %v1055_v24 = vld [vmem:[#allocation8 + $0x538] sm:$0xff]  ;;  %v2734_v28 = vpack.c.bf16 %v1061_v23, %v1053_v22  ;;  %v1118_v22 = vld [vmem:[#allocation8 + $0x730] sm:$0xff] }
 0x217   :  { %2843 = vmatprep.subr.bf16.mxu1 %v2842_v30  ;;  %v1063_v25 = vld [vmem:[#allocation8 + $0x578] sm:$0xff]  ;;  %v1052_v30 = vld [vmem:[#allocation8 + $0x520] sm:$0xff] }
 0x218   :  { %v2862_v32 = vpack.c.bf16 %v1063_v25, %v1055_v24  ;;  %v2736_v41 = vpack.c.bf16 %v1060_v31, %v1052_v30  ;;  %v1126_v24 = vld [vmem:[#allocation8 + $0x770] sm:$0xff]  ;;  %v1133_v25 = vld [vmem:[#allocation8 + $0x7a8] sm:$0xff] }
 0x219   :  { %2717 = vmatpush1.bf16.msra.mxu0 %v2716_v36  ;;  %v1077_v36 = vld [vmem:[#allocation8 + $0x5e8] sm:$0xff]  ;;  %v2880_v31 = vpack.c.bf16 %v1126_v24, %v1118_v22  ;;  %v1196_v22 = vld [vmem:[#allocation8 + $0x9a0] sm:$0xff]  ;;  %v1198_v24 = vld [vmem:[#allocation8 + $0x9b0] sm:$0xff] }
 0x21a   :  { %2845 = vmatpush1.bf16.msra.mxu1 %v2844_v39  ;;  %2719 = vmatprep.subr.bf16.mxu0 %v2718_v40  ;;  %v1071_v39 = vld [vmem:[#allocation8 + $0x5b8] sm:$0xff]  ;;  %v2738_v43 = vpack.c.bf16 %v1077_v36, %v1069_v35  ;;  %v1134_v35 = vld [vmem:[#allocation8 + $0x7b0] sm:$0xff] }
 0x21b   :  { %2847 = vmatprep.subr.bf16.mxu1 %v2846_v44  ;;  %v1079_v40 = vld [vmem:[#allocation8 + $0x5f8] sm:$0xff]  ;;  %v1068_v44 = vld [vmem:[#allocation8 + $0x5a0] sm:$0xff] }
 0x21c   :  { %v2866_v16 = vpack.c.bf16 %v1079_v40, %v1071_v39  ;;  %v2740_v51 = vpack.c.bf16 %v1076_v55, %v1068_v44  ;;  %v1142_v39 = vld [vmem:[#allocation8 + $0x7f0] sm:$0xff]  ;;  %v1149_v40 = vld [vmem:[#allocation8 + $0x828] sm:$0xff] }
 0x21d   :  { %2721 = vmatpush1.bf16.msra.mxu0 %v2720_v48  ;;  %v1093_v48 = vld [vmem:[#allocation8 + $0x668] sm:$0xff]  ;;  %v2884_v55 = vpack.c.bf16 %v1142_v39, %v1134_v35  ;;  %v1220_v35 = vld [vmem:[#allocation8 + $0xa60] sm:$0xff] }
 0x21e   :  { %2849 = vmatpush1.bf16.msra.mxu1 %v2848_v49  ;;  %2723 = vmatprep.subr.bf16.mxu0 %v2722_v50  ;;  %v1087_v49 = vld [vmem:[#allocation8 + $0x638] sm:$0xff]  ;;  %v2742_v53 = vpack.c.bf16 %v1093_v48, %v1085_v47  ;;  %v1150_v48 = vld [vmem:[#allocation8 + $0x830] sm:$0xff] }
 0x21f   :  { %2851 = vmatprep.subr.bf16.mxu1 %v2850_v54  ;;  %v1095_v50 = vld [vmem:[#allocation8 + $0x678] sm:$0xff]  ;;  %v1084_v54 = vld [vmem:[#allocation8 + $0x620] sm:$0xff] }
 0x220   :  { %v2870_v58 = vpack.c.bf16 %v1095_v50, %v1087_v49  ;;  %v2744_v1 = vpack.c.bf16 %v1092_v56, %v1084_v54  ;;  %v1158_v49 = vld [vmem:[#allocation8 + $0x870] sm:$0xff]  ;;  %v1165_v50 = vld [vmem:[#allocation8 + $0x8a8] sm:$0xff]  ;;  %v1175_v54 = vld [vmem:[#allocation8 + $0x8f8] sm:$0xff] }
 0x221   :  { %2725 = vmatpush1.bf16.msra.mxu0 %v2724_v62  ;;  %v1109_v62 = vld [vmem:[#allocation8 + $0x6e8] sm:$0xff]  ;;  %v2888_v56 = vpack.c.bf16 %v1158_v49, %v1150_v48  ;;  %v1230_v48 = vld [vmem:[#allocation8 + $0xab0] sm:$0xff] }
 0x222   :  { %2853 = vmatpush1.bf16.msra.mxu1 %v2852_v61  ;;  %2727 = vmatprep.subr.bf16.mxu0 %v2726_v63  ;;  %v1103_v61 = vld [vmem:[#allocation8 + $0x6b8] sm:$0xff]  ;;  %v2746_v3 = vpack.c.bf16 %v1109_v62, %v1101_v60  ;;  %v1174_v62 = vld [vmem:[#allocation8 + $0x8f0] sm:$0xff] }
 0x223   :  { %2855 = vmatprep.subr.bf16.mxu1 %v2854_v4  ;;  %v1111_v63 = vld [vmem:[#allocation8 + $0x6f8] sm:$0xff]  ;;  %v1100_v4 = vld [vmem:[#allocation8 + $0x6a0] sm:$0xff] }
 0x224   :  { %v2874_v8 = vpack.c.bf16 %v1111_v63, %v1103_v61  ;;  %v2748_v14 = vpack.c.bf16 %v1108_v6, %v1100_v4  ;;  %v1181_v61 = vld [vmem:[#allocation8 + $0x928] sm:$0xff]  ;;  %v2892_v6 = vpack.c.bf16 %v1174_v62, %v1166_v59  ;;  %v1244_v59 = vld [vmem:[#allocation8 + $0xb20] sm:$0xff]  ;;  %v1246_v62 = vld [vmem:[#allocation8 + $0xb30] sm:$0xff] }
 0x225   :  { %2729 = vmatpush1.bf16.msra.mxu0 %v2728_v11  ;;  %v1125_v11 = vld [vmem:[#allocation8 + $0x768] sm:$0xff] }
 0x226   :  { %2857 = vmatpush1.bf16.msra.mxu1 %v2856_v12  ;;  %2731 = vmatprep.subr.bf16.mxu0 %v2730_v13  ;;  %v1119_v12 = vld [vmem:[#allocation8 + $0x738] sm:$0xff]  ;;  %v2750_v18 = vpack.c.bf16 %v1125_v11, %v1117_v10  ;;  %v1189_v63 = vld [vmem:[#allocation8 + $0x968] sm:$0xff]  ;;  %v1182_v10 = vld [vmem:[#allocation8 + $0x930] sm:$0xff] }
 0x227   :  { %2859 = vmatprep.subr.bf16.mxu1 %v2858_v19  ;;  %v1127_v13 = vld [vmem:[#allocation8 + $0x778] sm:$0xff]  ;;  %v1116_v19 = vld [vmem:[#allocation8 + $0x720] sm:$0xff]  ;;  %v2766_v7 = vpack.c.bf16 %v1189_v63, %v1181_v61  ;;  %v1254_v63 = vld [vmem:[#allocation8 + $0xb70] sm:$0xff] }
 0x228   :  { %v2878_v23 = vpack.c.bf16 %v1127_v13, %v1119_v12  ;;  %v2752_v30 = vpack.c.bf16 %v1124_v21, %v1116_v19  ;;  %v1190_v12 = vld [vmem:[#allocation8 + $0x970] sm:$0xff]  ;;  %v1197_v13 = vld [vmem:[#allocation8 + $0x9a8] sm:$0xff] }
 0x229   :  { %2733 = vmatpush1.bf16.msra.mxu0 %v2732_v26  ;;  %v1141_v26 = vld [vmem:[#allocation8 + $0x7e8] sm:$0xff]  ;;  %v2896_v19 = vpack.c.bf16 %v1190_v12, %v1182_v10  ;;  %v1268_v10 = vld [vmem:[#allocation8 + $0xbe0] sm:$0xff] }
 0x22a   :  { %2861 = vmatpush1.bf16.msra.mxu1 %v2860_v27  ;;  %2735 = vmatprep.subr.bf16.mxu0 %v2734_v28  ;;  %v1135_v27 = vld [vmem:[#allocation8 + $0x7b8] sm:$0xff]  ;;  %v2754_v20 = vpack.c.bf16 %v1141_v26, %v1133_v25  ;;  %v1213_v26 = vld [vmem:[#allocation8 + $0xa28] sm:$0xff] }
 0x22b   :  { %2863 = vmatprep.subr.bf16.mxu1 %v2862_v32  ;;  %v1143_v28 = vld [vmem:[#allocation8 + $0x7f8] sm:$0xff]  ;;  %v1132_v32 = vld [vmem:[#allocation8 + $0x7a0] sm:$0xff] }
 0x22c   :  { %v2882_v36 = vpack.c.bf16 %v1143_v28, %v1135_v27  ;;  %v2756_v44 = vpack.c.bf16 %v1140_v34, %v1132_v32  ;;  %v1221_v27 = vld [vmem:[#allocation8 + $0xa68] sm:$0xff]  ;;  %v1215_v28 = vld [vmem:[#allocation8 + $0xa38] sm:$0xff]  ;;  %v1212_v34 = vld [vmem:[#allocation8 + $0xa20] sm:$0xff] }
 0x22d   :  { %2737 = vmatpush1.bf16.msra.mxu0 %v2736_v41  ;;  %v1157_v41 = vld [vmem:[#allocation8 + $0x868] sm:$0xff]  ;;  %v2774_v32 = vpack.c.bf16 %v1221_v27, %v1213_v26  ;;  %v1286_v26 = vld [vmem:[#allocation8 + $0xc70] sm:$0xff] }
 0x22e   :  { %2865 = vmatpush1.bf16.msra.mxu1 %v2864_v42  ;;  %2739 = vmatprep.subr.bf16.mxu0 %v2738_v43  ;;  %v1151_v42 = vld [vmem:[#allocation8 + $0x838] sm:$0xff]  ;;  %v2758_v45 = vpack.c.bf16 %v1157_v41, %v1149_v40  ;;  %v1222_v40 = vld [vmem:[#allocation8 + $0xa70] sm:$0xff]  ;;  %v1229_v41 = vld [vmem:[#allocation8 + $0xaa8] sm:$0xff] }
 0x22f   :  { %2867 = vmatprep.subr.bf16.mxu1 %v2866_v16  ;;  %v1159_v43 = vld [vmem:[#allocation8 + $0x878] sm:$0xff]  ;;  %v1148_v16 = vld [vmem:[#allocation8 + $0x820] sm:$0xff]  ;;  %v1293_v27 = vld [vmem:[#allocation8 + $0xca8] sm:$0xff] }
 0x230   :  { %v2886_v47 = vpack.c.bf16 %v1159_v43, %v1151_v42  ;;  %v1237_v42 = vld [vmem:[#allocation8 + $0xae8] sm:$0xff]  ;;  %v1231_v43 = vld [vmem:[#allocation8 + $0xab8] sm:$0xff] }
 0x231   :  { %2741 = vmatpush1.bf16.msra.mxu0 %v2740_v51  ;;  %v1173_v51 = vld [vmem:[#allocation8 + $0x8e8] sm:$0xff] }
 0x232   :  { %2869 = vmatpush1.bf16.msra.mxu1 %v2868_v52  ;;  %2743 = vmatprep.subr.bf16.mxu0 %v2742_v53  ;;  %v2760_v52 = vpack.c.bf16 %v1156_v46, %v1148_v16  ;;  %v1167_v53 = vld [vmem:[#allocation8 + $0x8b8] sm:$0xff]  ;;  %v2762_v60 = vpack.c.bf16 %v1173_v51, %v1165_v50  ;;  %v2778_v16 = vpack.c.bf16 %v1237_v42, %v1229_v41  ;;  %v1228_v46 = vld [vmem:[#allocation8 + $0xaa0] sm:$0xff]  ;;  %v1238_v50 = vld [vmem:[#allocation8 + $0xaf0] sm:$0xff] }
 0x233   :  { %2871 = vmatprep.subr.bf16.mxu1 %v2870_v58  ;;  %v1172_v58 = vld [vmem:[#allocation8 + $0x8e0] sm:$0xff]  ;;  %v1245_v51 = vld [vmem:[#allocation8 + $0xb28] sm:$0xff]  ;;  %v1302_v41 = vld [vmem:[#allocation8 + $0xcf0] sm:$0xff] }
 0x234   :  { %v2764_v4 = vpack.c.bf16 %v1172_v58, %v1164_v57  ;;  %v2908_v57 = vpack.c.bf16 %v1238_v50, %v1230_v48  ;;  %v1309_v42 = vld [vmem:[#allocation8 + $0xd28] sm:$0xff]  ;;  %v1316_v48 = vld [vmem:[#allocation8 + $0xd60] sm:$0xff] }
 0x235   :  { %2745 = vmatpush1.bf16.msra.mxu0 %v2744_v1  ;;  %v2890_v1 = vpack.c.bf16 %v1175_v54, %v1167_v53  ;;  %v1247_v53 = vld [vmem:[#allocation8 + $0xb38] sm:$0xff] }
 0x236   :  { %2873 = vmatpush1.bf16.msra.mxu1 %v2872_v2  ;;  %2747 = vmatprep.subr.bf16.mxu0 %v2746_v3  ;;  %v1183_v2 = vld [vmem:[#allocation8 + $0x938] sm:$0xff] }
 0x237   :  { %2875 = vmatprep.subr.bf16.mxu1 %v2874_v8  ;;  %v1191_v3 = vld [vmem:[#allocation8 + $0x978] sm:$0xff]  ;;  %v1180_v8 = vld [vmem:[#allocation8 + $0x920] sm:$0xff] }
 0x238   :  { %v2894_v11 = vpack.c.bf16 %v1191_v3, %v1183_v2  ;;  %v1255_v54 = vld [vmem:[#allocation8 + $0xb78] sm:$0xff]  ;;  %v1269_v2 = vld [vmem:[#allocation8 + $0xbe8] sm:$0xff] }
 0x239   :  { %2749 = vmatpush1.bf16.msra.mxu0 %v2748_v14  ;;  %v1205_v14 = vld [vmem:[#allocation8 + $0x9e8] sm:$0xff]  ;;  %v2910_v61 = vpack.c.bf16 %v1255_v54, %v1247_v53  ;;  %v1263_v3 = vld [vmem:[#allocation8 + $0xbb8] sm:$0xff] }
 0x23a   :  { %2877 = vmatpush1.bf16.msra.mxu1 %v2876_v15  ;;  %2751 = vmatprep.subr.bf16.mxu0 %v2750_v18  ;;  %v1199_v15 = vld [vmem:[#allocation8 + $0x9b8] sm:$0xff]  ;;  %v2768_v18 = vpack.c.bf16 %v1188_v9, %v1180_v8  ;;  %v2770_v21 = vpack.c.bf16 %v1205_v14, %v1197_v13  ;;  %v1260_v9 = vld [vmem:[#allocation8 + $0xba0] sm:$0xff]  ;;  %v1270_v13 = vld [vmem:[#allocation8 + $0xbf0] sm:$0xff] }
 0x23b   :  { %2879 = vmatprep.subr.bf16.mxu1 %v2878_v23  ;;  %v1204_v23 = vld [vmem:[#allocation8 + $0x9e0] sm:$0xff]  ;;  %v1277_v14 = vld [vmem:[#allocation8 + $0xc28] sm:$0xff]  ;;  %v1327_v54 = vld [vmem:[#allocation8 + $0xdb8] sm:$0xff] }
 0x23c   :  { %v1333_v53 = vld [vmem:[#allocation8 + $0xde8] sm:$0xff] }
 0x23d   :  { %2753 = vmatpush1.bf16.msra.mxu0 %v2752_v30  ;;  %v1223_v30 = vld [vmem:[#allocation8 + $0xa78] sm:$0xff] }
 0x23e   :  { %2881 = vmatpush1.bf16.msra.mxu1 %v2880_v31  ;;  %2755 = vmatprep.subr.bf16.mxu0 %v2754_v20  ;;  %v2772_v31 = vpack.c.bf16 %v1204_v23, %v1196_v22  ;;  %v2902_v39 = vpack.c.bf16 %v1223_v30, %v1215_v28  ;;  %v1276_v23 = vld [vmem:[#allocation8 + $0xc20] sm:$0xff]  ;;  %v1301_v28 = vld [vmem:[#allocation8 + $0xce8] sm:$0xff]  ;;  %v1295_v30 = vld [vmem:[#allocation8 + $0xcb8] sm:$0xff] }
 0x23f   :  { %2883 = vmatprep.subr.bf16.mxu1 %v2882_v36  ;;  %v1214_v36 = vld [vmem:[#allocation8 + $0xa30] sm:$0xff] }
 0x241   :  { %2757 = vmatpush1.bf16.msra.mxu0 %v2756_v44  ;;  %v1239_v44 = vld [vmem:[#allocation8 + $0xaf8] sm:$0xff] }
 0x242   :  { %2885 = vmatpush1.bf16.msra.mxu1 %v2884_v55  ;;  %2759 = vmatprep.subr.bf16.mxu0 %v2758_v45  ;;  %v2776_v55 = vpack.c.bf16 %v1220_v35, %v1212_v34  ;;  %v2904_v45 = vpack.c.bf16 %v1222_v40, %v1214_v36  ;;  %v2906_v49 = vpack.c.bf16 %v1239_v44, %v1231_v43  ;;  %v1292_v35 = vld [vmem:[#allocation8 + $0xca0] sm:$0xff]  ;;  %v1317_v43 = vld [vmem:[#allocation8 + $0xd68] sm:$0xff]  ;;  %v1311_v44 = vld [vmem:[#allocation8 + $0xd38] sm:$0xff] }
 0x243   :  { %2887 = vmatprep.subr.bf16.mxu1 %v2886_v47  ;;  %v1236_v47 = vld [vmem:[#allocation8 + $0xae0] sm:$0xff]  ;;  %v2794_v34 = vpack.c.bf16 %v1301_v28, %v1293_v27  ;;  %v1366_v27 = vld [vmem:[#allocation8 + $0xef0] sm:$0xff]  ;;  %v1373_v28 = vld [vmem:[#allocation8 + $0xf28] sm:$0xff] }
 0x244   :  { %1749 = vmatmul.mubr.f32.vlgmr.msra.gmra.mrb[10].mxu0 %v3485_v5  ;;  %v1300_v36 = vld [vmem:[#allocation8 + $0xce0] sm:$0xff] }
 0x245   :  { %1891 = vmatmul.mubr.f32.vlgmr.msra.gmra.mrb[10].mxu1 %v3485_v5  ;;  %2761 = vmatpush1.bf16.msra.mxu0 %v2760_v52  ;;  %v1207_v5 = vld [vmem:[#allocation8 + $0x9f8] sm:$0xff]  ;;  %v1253_v52 = vld [vmem:[#allocation8 + $0xb68] sm:$0xff] }
 0x246   :  { %1819 = vmatprep.mubr.f32.mxu0 %v3494_v29  ;;  %2889 = vmatpush1.bf16.msra.mxu1 %v2888_v56  ;;  %v2898_v25 = vpack.c.bf16 %v1207_v5, %v1199_v15  ;;  %v2780_v56 = vpack.c.bf16 %v1236_v47, %v1228_v46  ;;  %v2782_v58 = vpack.c.bf16 %v1253_v52, %v1245_v51  ;;  %v1285_v15 = vld [vmem:[#allocation8 + $0xc68] sm:$0xff]  ;;  %v1279_v5 = vld [vmem:[#allocation8 + $0xc38] sm:$0xff]  ;;  %v1308_v47 = vld [vmem:[#allocation8 + $0xd20] sm:$0xff] }
 0x247   :  { %1961 = vmatprep.mubr.f32.mxu1 %v3494_v29  ;;  %2763 = vmatprep.subr.bf16.mxu0 %v2762_v60  ;;  %v1206_v29 = vld [vmem:[#allocation8 + $0x9f0] sm:$0xff]  ;;  %v1252_v60 = vld [vmem:[#allocation8 + $0xb60] sm:$0xff]  ;;  %v2790_v22 = vpack.c.bf16 %v1285_v15, %v1277_v14  ;;  %v2798_v46 = vpack.c.bf16 %v1317_v43, %v1309_v42  ;;  %v1325_v52 = vld [vmem:[#allocation8 + $0xda8] sm:$0xff] }
 0x248   :  { %2891 = vmatprep.subr.bf16.mxu1 %v2890_v1  ;;  %v2900_v20 = vpack.c.bf16 %v1206_v29, %v1198_v24  ;;  %v1261_v1 = vld [vmem:[#allocation8 + $0xba8] sm:$0xff]  ;;  %v1284_v24 = vld [vmem:[#allocation8 + $0xc60] sm:$0xff]  ;;  %v1318_v51 = vld [vmem:[#allocation8 + $0xd70] sm:$0xff] }
 0x249   :  { %2765 = vmatpush1.bf16.msra.mxu0 %v2764_v4  ;;  %v1271_v4 = vld [vmem:[#allocation8 + $0xbf8] sm:$0xff]  ;;  %v2786_v8 = vpack.c.bf16 %v1269_v2, %v1261_v1  ;;  %v1334_v1 = vld [vmem:[#allocation8 + $0xdf0] sm:$0xff]  ;;  %v1341_v2 = vld [vmem:[#allocation8 + $0xe28] sm:$0xff] }
 0x24a   :  { %2893 = vmatpush1.bf16.msra.mxu1 %v2892_v6  ;;  %2767 = vmatprep.subr.bf16.mxu0 %v2766_v7  ;;  %v2784_v6 = vpack.c.bf16 %v1252_v60, %v1244_v59  ;;  %v2912_v7 = vpack.c.bf16 %v1254_v63, %v1246_v62  ;;  %v2914_v12 = vpack.c.bf16 %v1271_v4, %v1263_v3  ;;  %v1324_v60 = vld [vmem:[#allocation8 + $0xda0] sm:$0xff]  ;;  %v1349_v3 = vld [vmem:[#allocation8 + $0xe68] sm:$0xff]  ;;  %v1343_v4 = vld [vmem:[#allocation8 + $0xe38] sm:$0xff] }
 0x24b   :  { %2895 = vmatprep.subr.bf16.mxu1 %v2894_v11  ;;  %v1262_v11 = vld [vmem:[#allocation8 + $0xbb0] sm:$0xff]  ;;  %v2802_v59 = vpack.c.bf16 %v1333_v53, %v1325_v52  ;;  %v1332_v62 = vld [vmem:[#allocation8 + $0xde0] sm:$0xff]  ;;  %v1357_v15 = vld [vmem:[#allocation8 + $0xea8] sm:$0xff] }
 0x24c   :  { %v1350_v14 = vld [vmem:[#allocation8 + $0xe70] sm:$0xff]  ;;  %v1389_v43 = vld [vmem:[#allocation8 + $0xfa8] sm:$0xff] }
 0x24d   :  { %2769 = vmatpush1.bf16.msra.mxu0 %v2768_v18  ;;  %v1287_v18 = vld [vmem:[#allocation8 + $0xc78] sm:$0xff]  ;;  %v1382_v42 = vld [vmem:[#allocation8 + $0xf70] sm:$0xff]  ;;  %v2006_v53 = vld [vmem:[#allocation11 + $0x80] sm:$0xff] }
 0x24e   :  { %2897 = vmatpush1.bf16.msra.mxu1 %v2896_v19  ;;  %2771 = vmatprep.subr.bf16.mxu0 %v2770_v21  ;;  %v2788_v19 = vpack.c.bf16 %v1268_v10, %v1260_v9  ;;  %v2916_v21 = vpack.c.bf16 %v1270_v13, %v1262_v11  ;;  %v2918_v29 = vpack.c.bf16 %v1287_v18, %v1279_v5  ;;  %v1340_v10 = vld [vmem:[#allocation8 + $0xe20] sm:$0xff]  ;;  %v1365_v5 = vld [vmem:[#allocation8 + $0xee8] sm:$0xff]  ;;  %v1359_v18 = vld [vmem:[#allocation8 + $0xeb8] sm:$0xff] }
 0x24f   :  { %2899 = vmatprep.subr.bf16.mxu1 %v2898_v25  ;;  %v1278_v25 = vld [vmem:[#allocation8 + $0xc30] sm:$0xff]  ;;  %v2806_v9 = vpack.c.bf16 %v1349_v3, %v1341_v2  ;;  %v1348_v11 = vld [vmem:[#allocation8 + $0xe60] sm:$0xff] }
 0x250   :  { %v1398_v52 = vld [vmem:[#allocation8 + $0xff0] sm:$0xff]  ;;  %v1993_v3 = vld [vmem:[#allocation11 + $0x18] sm:$0xff] }
 0x251   :  { %2773 = vmatpush1.bf16.msra.mxu0 %v2772_v31  ;;  %v1303_v31 = vld [vmem:[#allocation8 + $0xcf8] sm:$0xff] }
 0x252   :  { %2901 = vmatpush1.bf16.msra.mxu1 %v2900_v20  ;;  %2775 = vmatprep.subr.bf16.mxu0 %v2774_v32  ;;  %v2792_v20 = vpack.c.bf16 %v1284_v24, %v1276_v23  ;;  %v2920_v32 = vpack.c.bf16 %v1286_v26, %v1278_v25  ;;  %v2922_v40 = vpack.c.bf16 %v1303_v31, %v1295_v30  ;;  %v1356_v24 = vld [vmem:[#allocation8 + $0xea0] sm:$0xff]  ;;  %v1381_v30 = vld [vmem:[#allocation8 + $0xf68] sm:$0xff]  ;;  %v1375_v31 = vld [vmem:[#allocation8 + $0xf38] sm:$0xff] }
 0x253   :  { %2903 = vmatprep.subr.bf16.mxu1 %v2902_v39  ;;  %v1294_v39 = vld [vmem:[#allocation8 + $0xcb0] sm:$0xff]  ;;  %v2810_v23 = vpack.c.bf16 %v1365_v5, %v1357_v15  ;;  %v1364_v25 = vld [vmem:[#allocation8 + $0xee0] sm:$0xff] }
 0x254   :  { %v1992_v2 = vld [vmem:[#allocation11 + $0x10] sm:$0xff]  ;;  %v1997_v5 = vld [vmem:[#allocation11 + $0x38] sm:$0xff] }
 0x255   :  { %2777 = vmatpush1.bf16.msra.mxu0 %v2776_v55  ;;  %v1319_v55 = vld [vmem:[#allocation8 + $0xd78] sm:$0xff] }
 0x256   :  { %2905 = vmatpush1.bf16.msra.mxu1 %v2904_v45  ;;  %2779 = vmatprep.subr.bf16.mxu0 %v2778_v16  ;;  %v2796_v45 = vpack.c.bf16 %v1300_v36, %v1292_v35  ;;  %v2924_v16 = vpack.c.bf16 %v1302_v41, %v1294_v39  ;;  %v2926_v50 = vpack.c.bf16 %v1319_v55, %v1311_v44  ;;  %v1372_v36 = vld [vmem:[#allocation8 + $0xf20] sm:$0xff]  ;;  %v1397_v44 = vld [vmem:[#allocation8 + $0xfe8] sm:$0xff]  ;;  %v1391_v55 = vld [vmem:[#allocation8 + $0xfb8] sm:$0xff] }
 0x257   :  { %2907 = vmatprep.subr.bf16.mxu1 %v2906_v49  ;;  %v1310_v49 = vld [vmem:[#allocation8 + $0xd30] sm:$0xff]  ;;  %v2814_v35 = vpack.c.bf16 %v1381_v30, %v1373_v28  ;;  %v1380_v39 = vld [vmem:[#allocation8 + $0xf60] sm:$0xff] }
 0x258   :  { %v1996_v15 = vld [vmem:[#allocation11 + $0x30] sm:$0xff]  ;;  %v2001_v28 = vld [vmem:[#allocation11 + $0x58] sm:$0xff] }
 0x259   :  { %2781 = vmatpush1.bf16.msra.mxu0 %v2780_v56  ;;  %v1335_v56 = vld [vmem:[#allocation8 + $0xdf8] sm:$0xff] }
 0x25a   :  { %2909 = vmatpush1.bf16.msra.mxu1 %v2908_v57  ;;  %2783 = vmatprep.subr.bf16.mxu0 %v2782_v58  ;;  %v2800_v57 = vpack.c.bf16 %v1316_v48, %v1308_v47  ;;  %v2928_v58 = vpack.c.bf16 %v1318_v51, %v1310_v49  ;;  %v2930_v63 = vpack.c.bf16 %v1335_v56, %v1327_v54  ;;  %v1388_v48 = vld [vmem:[#allocation8 + $0xfa0] sm:$0xff]  ;;  %v2007_v54 = vld [vmem:[#allocation11 + $0x88] sm:$0xff] }
 0x25b   :  { %2911 = vmatprep.subr.bf16.mxu1 %v2910_v61  ;;  %v1326_v61 = vld [vmem:[#allocation8 + $0xdb0] sm:$0xff]  ;;  %v2818_v47 = vpack.c.bf16 %v1397_v44, %v1389_v43  ;;  %v1396_v49 = vld [vmem:[#allocation8 + $0xfe0] sm:$0xff] }
 0x25c   :  { %v2820_v56 = vpack.c.bf16 %v1396_v49, %v1388_v48  ;;  %v2003_v43 = vld [vmem:[#allocation11 + $0x68] sm:$0xff] }
 0x25d   :  { %2785 = vmatpush1.bf16.msra.mxu0 %v2784_v6  ;;  %v1351_v6 = vld [vmem:[#allocation8 + $0xe78] sm:$0xff]  ;;  %v2100_v49 = vld [vmem:[#allocation14] sm:$0xff] }
 0x25e   :  { %2913 = vmatpush1.bf16.msra.mxu1 %v2912_v7  ;;  %2787 = vmatprep.subr.bf16.mxu0 %v2786_v8  ;;  %v2804_v7 = vpack.c.bf16 %v1332_v62, %v1324_v60  ;;  %v2932_v8 = vpack.c.bf16 %v1334_v1, %v1326_v61  ;;  %v2934_v13 = vpack.c.bf16 %v1351_v6, %v1343_v4  ;;  %v1991_v60 = vld [vmem:[#allocation11 + $0x8] sm:$0xff]  ;;  %v2008_v62 = vld [vmem:[#allocation11 + $0x90] sm:$0xff]  ;;  %v2009_v61 = vld [vmem:[#allocation11 + $0x98] sm:$0xff] }
 0x25f   :  { %2915 = vmatprep.subr.bf16.mxu1 %v2914_v12  ;;  %v1342_v12 = vld [vmem:[#allocation8 + $0xe30] sm:$0xff]  ;;  %v2954_v1 = vpack.c.bf16 %v2009_v61, %v2008_v62  ;;  %v2010_v4 = vld [vmem:[#allocation11 + $0xa0] sm:$0xff] }
 0x260   :  { %v2011_v6 = vld [vmem:[#allocation11 + $0xa8] sm:$0xff]  ;;  %v2107_v62 = vld [vmem:[#allocation14 + $0x38] sm:$0xff] }
 0x261   :  { %2789 = vmatpush1.bf16.msra.mxu0 %v2788_v19  ;;  %v1367_v19 = vld [vmem:[#allocation8 + $0xef8] sm:$0xff] }
 0x262   :  { %2917 = vmatpush1.bf16.msra.mxu1 %v2916_v21  ;;  %2791 = vmatprep.subr.bf16.mxu0 %v2790_v22  ;;  %v2808_v21 = vpack.c.bf16 %v1348_v11, %v1340_v10  ;;  %v2936_v22 = vpack.c.bf16 %v1350_v14, %v1342_v12  ;;  %v2938_v26 = vpack.c.bf16 %v1367_v19, %v1359_v18  ;;  %v1995_v10 = vld [vmem:[#allocation11 + $0x28] sm:$0xff]  ;;  %v2012_v11 = vld [vmem:[#allocation11 + $0xb0] sm:$0xff]  ;;  %v2013_v12 = vld [vmem:[#allocation11 + $0xb8] sm:$0xff] }
 0x263   :  { %2919 = vmatprep.subr.bf16.mxu1 %v2918_v29  ;;  %v1358_v29 = vld [vmem:[#allocation8 + $0xeb0] sm:$0xff]  ;;  %v2962_v14 = vpack.c.bf16 %v2013_v12, %v2012_v11  ;;  %v2014_v18 = vld [vmem:[#allocation11 + $0xc0] sm:$0xff] }
 0x264   :  { %v2015_v19 = vld [vmem:[#allocation11 + $0xc8] sm:$0xff] }
 0x265   :  { %2793 = vmatpush1.bf16.msra.mxu0 %v2792_v20  ;;  %v1383_v20 = vld [vmem:[#allocation8 + $0xf78] sm:$0xff] }
 0x266   :  { %2921 = vmatpush1.bf16.msra.mxu1 %v2920_v32  ;;  %2795 = vmatprep.subr.bf16.mxu0 %v2794_v34  ;;  %v2812_v32 = vpack.c.bf16 %v1364_v25, %v1356_v24  ;;  %v2940_v34 = vpack.c.bf16 %v1366_v27, %v1358_v29  ;;  %v2942_v41 = vpack.c.bf16 %v1383_v20, %v1375_v31  ;;  %v2016_v24 = vld [vmem:[#allocation11 + $0xd0] sm:$0xff]  ;;  %v2017_v25 = vld [vmem:[#allocation11 + $0xd8] sm:$0xff] }
 0x267   :  { %2923 = vmatprep.subr.bf16.mxu1 %v2922_v40  ;;  %v1374_v40 = vld [vmem:[#allocation8 + $0xf30] sm:$0xff] }
 0x268   :  { %v2000_v27 = vld [vmem:[#allocation11 + $0x50] sm:$0xff] }
 0x269   :  { %2797 = vmatpush1.bf16.msra.mxu0 %v2796_v45  ;;  %v1399_v45 = vld [vmem:[#allocation8 + $0xff8] sm:$0xff]  ;;  %v2972_v20 = vpack.c.bf16 %v2001_v28, %v2000_v27 }
 0x26a   :  { %2925 = vmatpush1.bf16.msra.mxu1 %v2924_v16  ;;  %2799 = vmatprep.subr.bf16.mxu0 %v2798_v46  ;;  %v2816_v16 = vpack.c.bf16 %v1380_v39, %v1372_v36  ;;  %v2944_v46 = vpack.c.bf16 %v1382_v42, %v1374_v40  ;;  %v2946_v51 = vpack.c.bf16 %v1399_v45, %v1391_v55  ;;  %v2018_v39 = vld [vmem:[#allocation11 + $0xe0] sm:$0xff]  ;;  %v2019_v40 = vld [vmem:[#allocation11 + $0xe8] sm:$0xff]  ;;  %v2020_v55 = vld [vmem:[#allocation11 + $0xf0] sm:$0xff] }
 0x26b   :  { %2927 = vmatprep.subr.bf16.mxu1 %v2926_v50  ;;  %v1390_v50 = vld [vmem:[#allocation8 + $0xfb0] sm:$0xff]  ;;  %v2002_v42 = vld [vmem:[#allocation11 + $0x60] sm:$0xff]  ;;  %v2021_v45 = vld [vmem:[#allocation11 + $0xf8] sm:$0xff] }
 0x26c   :  { %v2976_v44 = vpack.c.bf16 %v2003_v43, %v2002_v42 }
 0x26d   :  { %2801 = vmatpush1.bf16.msra.mxu0 %v2800_v57  ;;  %v2948_v57 = vpack.c.bf16 %v1398_v52, %v1390_v50  ;;  %v2101_v50 = vld [vmem:[#allocation14 + $0x8] sm:$0xff]  ;;  %v3279_v52 = vmov 0.0|0.0  }
 0x26e   :  { %2929 = vmatpush1.bf16.msra.mxu1 %v2928_v58  ;;  %2803 = vmatprep.subr.bf16.mxu0 %v2802_v59  ;;  %v2950_v58 = vpack.c.bf16 %v2007_v54, %v2006_v53  ;;  %v1990_v59 = vld [vmem:[#allocation11] sm:$0xff]  ;;  %v2983_v53 = vpack.c.bf16 %v2101_v50, %v2100_v49 }
 0x26f   :  { %2931 = vmatprep.subr.bf16.mxu1 %v2930_v63  ;;  %v2952_v63 = vpack.c.bf16 %v1991_v60, %v1990_v59  ;;  %v2103_v54 = vld [vmem:[#allocation14 + $0x18] sm:$0xff]  ;;  %v2106_v60 = vld [vmem:[#allocation14 + $0x30] sm:$0xff] }
 0x270   :  { %v2992_v61 = vpack.c.bf16 %v2107_v62, %v2106_v60 }
 0x271   :  { %2805 = vmatpush1.bf16.msra.mxu0 %v2804_v7  ;;  %v2956_v7 = vpack.c.bf16 %v1993_v3, %v1992_v2  ;;  %v2110_v3 = vld [vmem:[#allocation14 + $0x50] sm:$0xff] }
 0x272   :  { %2933 = vmatpush1.bf16.msra.mxu1 %v2932_v8  ;;  %2807 = vmatprep.subr.bf16.mxu0 %v2806_v9  ;;  %v2958_v8 = vpack.c.bf16 %v2011_v6, %v2010_v4  ;;  %v1994_v9 = vld [vmem:[#allocation11 + $0x20] sm:$0xff] }
 0x273   :  { %2935 = vmatprep.subr.bf16.mxu1 %v2934_v13  ;;  %v2960_v13 = vpack.c.bf16 %v1995_v10, %v1994_v9  ;;  %v2111_v4 = vld [vmem:[#allocation14 + $0x58] sm:$0xff] }
 0x274   :  { %v2998_v6 = vpack.c.bf16 %v2111_v4, %v2110_v3 }
 0x275   :  { %2809 = vmatpush1.bf16.msra.mxu0 %v2808_v21  ;;  %v2964_v21 = vpack.c.bf16 %v1997_v5, %v1996_v15 }
 0x276   :  { %2937 = vmatpush1.bf16.msra.mxu1 %v2936_v22  ;;  %2811 = vmatprep.subr.bf16.mxu0 %v2810_v23  ;;  %v1998_v22 = vld [vmem:[#allocation11 + $0x40] sm:$0xff]  ;;  %v1999_v23 = vld [vmem:[#allocation11 + $0x48] sm:$0xff] }
 0x277   :  { %2939 = vmatprep.subr.bf16.mxu1 %v2938_v26  ;;  %v2968_v29 = vpack.c.bf16 %v1999_v23, %v1998_v22  ;;  %v2970_v26 = vpack.c.bf16 %v2017_v25, %v2016_v24  ;;  %v2112_v23 = vld [vmem:[#allocation14 + $0x60] sm:$0xff]  ;;  %v2113_v24 = vld [vmem:[#allocation14 + $0x68] sm:$0xff] }
 0x278   :  { %v3001_v25 = vpack.c.bf16 %v2113_v24, %v2112_v23 }
 0x279   :  { %2813 = vmatpush1.bf16.msra.mxu0 %v2812_v32 }
 0x27a   :  { %2941 = vmatpush1.bf16.msra.mxu1 %v2940_v34  ;;  %2815 = vmatprep.subr.bf16.mxu0 %v2814_v35 }
 0x27b   :  { %2943 = vmatprep.subr.bf16.mxu1 %v2942_v41  ;;  %v2974_v41 = vpack.c.bf16 %v2019_v40, %v2018_v39 }
 0x27d   :  { %2817 = vmatpush1.bf16.msra.mxu0 %v2816_v16  ;;  %v2978_v16 = vpack.c.bf16 %v2021_v45, %v2020_v55 }
 0x27e   :  { %2945 = vmatpush1.bf16.msra.mxu1 %v2944_v46  ;;  %2819 = vmatprep.subr.bf16.mxu0 %v2818_v47  ;;  %v2004_v46 = vld [vmem:[#allocation11 + $0x70] sm:$0xff]  ;;  %v2005_v47 = vld [vmem:[#allocation11 + $0x78] sm:$0xff] }
 0x27f   :  { %2947 = vmatprep.subr.bf16.mxu1 %v2946_v51  ;;  %v2980_v48 = vpack.c.bf16 %v2005_v47, %v2004_v46  ;;  %v2102_v51 = vld [vmem:[#allocation14 + $0x10] sm:$0xff] }
 0x281   :  { %2821 = vmatpush1.bf16.msra.mxu0 %v2820_v56  ;;  %v2986_v56 = vpack.c.bf16 %v2103_v54, %v2102_v51 }
 0x282   :  { %2949 = vmatpush1.bf16.msra.mxu1 %v2948_v57  ;;  %2951 = vmatprep.subr.bf16.mxu0 %v2950_v58  ;;  %v2104_v57 = vld [vmem:[#allocation14 + $0x20] sm:$0xff]  ;;  %v2105_v58 = vld [vmem:[#allocation14 + $0x28] sm:$0xff] }
 0x283   :  { %2982 = vmatprep.subr.bf16.mxu1 %v3279_v52  ;;  %v2989_v59 = vpack.c.bf16 %v2105_v58, %v2104_v57 }
 0x284   :  { %1820 = vmatmul.mubr.f32.vlgmr.msra.gmra.mrb[10].mxu0 %v3499_v33 }
 0x285   :  { %1962 = vmatmul.mubr.f32.vlgmr.msra.gmra.mrb[10].mxu1 %v3499_v33  ;;  %2953 = vmatpush3.bf16.msra.mxu0 %v2952_v63  ;;  %v2966_v33 = vpack.c.bf16 %v2015_v19, %v2014_v18  ;;  %v2108_v63 = vld [vmem:[#allocation14 + $0x40] sm:$0xff] }
 0x286   :  { %2955 = vmatprep.subr.bf16.mxu0 %v2954_v1  ;;  %2984 = vmatpush3.bf16.msra.mxu1 %v2983_v53  ;;  %v2109_v1 = vld [vmem:[#allocation14 + $0x48] sm:$0xff] }
 0x287   :  { %2985 = vmatprep.subr.bf16.mxu1 %v3279_v52  ;;  %v2995_v2 = vpack.c.bf16 %v2109_v1, %v2108_v63  ;;  %2307 = vmatprep.mubr.msk.f32.mxu1 %vm3280_vm1, %v3278_v0 }
 0x289   :  { %2957 = vmatpush3.bf16.msra.mxu0 %v2956_v7  ;;  %v1974_v7 = vld [vmem:[#allocation10] sm:$0x3] }
 0x28a   :  { %2959 = vmatprep.subr.bf16.mxu0 %v2958_v8  ;;  %2987 = vmatpush3.bf16.msra.mxu1 %v2986_v56  ;;  %v1979_v12 = vrot.slane %v1974_v7, %v862_v37  ;;  %v1983_v15 = vrot.slane %v1974_v7, %v866_v38  ;;  %v2115_v37 = vld [vmem:[#allocation14 + $0x78] sm:$0xff] }
 0x28b   :  { %2988 = vmatprep.subr.bf16.mxu1 %v3279_v52  ;;  %v2221_v38 = vld [vmem:[#allocation13] ss:$0 sm:$0xff] }
 0x28d   :  { %2961 = vmatpush3.bf16.msra.mxu0 %v2960_v13 }
 0x28e   :  { %2963 = vmatprep.subr.bf16.mxu0 %v2962_v14  ;;  %2990 = vmatpush3.bf16.msra.mxu1 %v2989_v59 }
 0x28f   :  { %2991 = vmatprep.subr.bf16.mxu1 %v3279_v52 }
 0x291   :  { %2965 = vmatpush3.bf16.msra.mxu0 %v2964_v21 }
 0x292   :  { %2967 = vmatprep.subr.bf16.mxu0 %v2966_v33  ;;  %2993 = vmatpush3.bf16.msra.mxu1 %v2992_v61 }
 0x293   :  { %2994 = vmatprep.subr.bf16.mxu1 %v3279_v52 }
 0x295   :  { %2969 = vmatpush3.bf16.msra.mxu0 %v2968_v29  ;;  %v2114_v29 = vld [vmem:[#allocation14 + $0x70] sm:$0xff] }
 0x296   :  { %2971 = vmatprep.subr.bf16.mxu0 %v2970_v26  ;;  %2996 = vmatpush3.bf16.msra.mxu1 %v2995_v2  ;;  %v3004_v26 = vpack.c.bf16 %v2115_v37, %v2114_v29 }
 0x297   :  { %2997 = vmatprep.subr.bf16.mxu1 %v3279_v52 }
 0x299   :  { %2973 = vmatpush3.bf16.msra.mxu0 %v2972_v20  ;;  %v2222_v20 = vld [vmem:[#allocation16] ss:$0 sm:$0xff] }
 0x29a   :  { %2975 = vmatprep.subr.bf16.mxu0 %v2974_v41  ;;  %2999 = vmatpush3.bf16.msra.mxu1 %v2998_v6 }
 0x29b   :  { %3000 = vmatprep.subr.bf16.mxu1 %v3279_v52 }
 0x29d   :  { %2977 = vmatpush3.bf16.msra.mxu0 %v2976_v44 }
 0x29e   :  { %2979 = vmatprep.subr.bf16.mxu0 %v2978_v16  ;;  %3002 = vmatpush3.bf16.msra.mxu1 %v3001_v25 }
 0x29f   :  { %3003 = vmatprep.subr.bf16.mxu1 %v3279_v52 }
 0x2a1   :  { %2981 = vmatpush3.bf16.msra.mxu0 %v2980_v48 }
 0x2a2   :  { %3005 = vmatpush3.bf16.msra.mxu1 %v3004_v26 }
 0x2d7   :  { %v3511_v30 = vpop.f32.mrb[8].mxu0  ;;  %v3513_v31 = vpop.f32.mrb[8].mxu1 }
 0x2d8   :  { %v1968_v32 = vmax.f32 %v3511_v30, %v3513_v31  ;;  %v3517_v34 = vpop.f32.mrb[9].mxu0  ;;  %v1681_v35 = vpop.f32.mrb[9].mxu1 }
 0x2d9   :  { %v1969_v36 = vmax.f32 %v3517_v34, %v1681_v35 }
 0x357   :  { %v1821_v8 = vpop.f32.mrb[10].mxu0 }
 0x358   :  { %v1963_v9 = vpop.f32.mrb[10].mxu1  ;;  %v1823_v10 = vpop.f32.mrb[11].mxu0 }
 0x359   :  { %v1970_v11 = vmax.f32 %v1821_v8, %v1963_v9  ;;  %v1965_v13 = vpop.f32.mrb[11].mxu1 }
 0x35a   :  { %v1971_v14 = vmax.f32 %v1823_v10, %v1965_v13 }
 0x35b   :  { %v1972_v5 = vmax.f32 %v1968_v32, %v1970_v11 }
 0x35c   :  { %v1973_v18 = vmax.f32 %v1969_v36, %v1971_v14 }
 0x35d   :  { %v1986_v19 = vadd.f32 %v1979_v12, %v1972_v5 }
 0x35e   :  { %v1987_v21 = vadd.f32 %v1983_v15, %v1973_v18 }
 0x35f   :  { %v1988_v22 = vmax.f32 %v1986_v19, 0.0 }
 0x360   :  { %v1989_v33 = vmax.f32 %v1987_v21, 0.0 }
 0x362   :  { %2093 = vmatprep.mubr.f32.mxu0 %v1989_v33 }
 0x363   :  { %2094 = vmatmul.mubr.f32.vlgmr.msra.gmra.mrb[12].mxu0 %v1988_v22 }
 0x436   :  { %v2255_v17 = vpop.f32.mrb[12].mxu0 }
 0x437   :  { %v2256_v27 = vpop.f32.mrb[13].mxu0 }
 0x438   :  { %v2257_v28 = vadd.f32 %v2256_v27, %v2255_v17 }
 0x43a   :  { %v2096_v30 = vadd.f32 %v2257_v28, %v2221_v38 }
 0x43c   :  { %v2099_v31 = vmax.f32 %v2096_v30, 0.0 }
 0x43e   :  { %2308 = vmatmul.mubr.f32.vlgmr.msra.gmra.mrb[12].mxu1 %v2099_v31 }
 0x511   :  { %v2189_v32 = vpop.f32.mrb[12].mxu1 }
 0x512   :  { %v2190_v34 = vadd.f32 %v2222_v20, %v2189_v32  ;;  %v2309_v35 = vpop.f32.mrb[13].mxu1 }
 0x514   :  { %2193 = vst [vmem:[#allocation17] sm:$0xff] %v2190_v34 }
 0x515   :  { %3241 = shalt.err (!%p3238_p6)
}
 0x516   :  { %s3242_s29 = scalar_lea.hbm %s3546_s9, 128 }
 0x517   :  { %p3243_p7 = scmp.ne.s32.totalorder %s3546_s9, %s3242_s29  ;;  %p3246_p8 = scmp.lt.u32.totalorder %s3242_s29, %s3546_s9 }
 0x519   :  { %p3248_p9 = pnand %p3246_p8, %p3243_p7 }
 0x51b   :  { %3251 = shalt.err (!%p3248_p9)
}
 0x51c   :  { %2203 = dma.vmem_to_hbm [thread:$0]  %s2201_s3, 128, %s3546_s9, [#allocation4]  }
 0x51d   :  { %3262 = dma.done.wait [#allocation4], 128  }
 0x51e   :  { %3263 = vsyncadd [#allocation4], 4294967168 }
 0x51f   :  { %2207 = vsyncpa [#allocation3], 1 }
 0x520   :  { %2208 = vsyncpa [#allocation6], 1 }
 0x521   :  { %2209 = vsyncpa [#allocation9], 1 }
 0x522   :  { %2210 = vsyncpa [#allocation12], 1 }
 0x523   :  { %2211 = vsyncpa [#allocation15], 1 }
 0x524   :  { %2212 = vsyncpa [#allocation4], 1 }

</bundles_post_ra>
